<compile_context>
chip_gen: v5e
topology: v5e:2x2
jax: 0.10.0
libtpu: 0.0.40
codegen_flags: <defaults>
</compile_context>

<pallas_src>
import functools
import math

import jax
import jax.numpy as jnp
from jax.experimental import pallas as pl
from jax.experimental.pallas import tpu as pltpu


# ----------------------------------------------------------------------------
# Pallas kernel: one packed batch block (block_b sequences, lane-dense slab).
# ----------------------------------------------------------------------------
def _rga_kernel(src_ref, attn_ref, mask_ref, w1_ref, t1_ref, w2_ref, t2_ref,
                out_ref, bd_ref, *, kernel_size, seq_len, pad_len, block_b):
    _, C, Lb = src_ref.shape          # Lb = block_b * pad_len (packed lane dim)
    K = kernel_size
    pad = K // 2
    L = seq_len                       # valid columns per packed sequence
    Lp = pad_len                      # per-sequence segment width inside the slab

    # Build the block-diagonal attention for this packed block directly in VMEM
    # (never materialized in HBM).  Re-zero every step (cheap Lb*Lb store) so the
    # kernel is correct even when the "parallel" grid axis is split across
    # multiple TensorCores -- each core owns its own scratch and may never see
    # grid step 0.
    bd_ref[...] = jnp.zeros_like(bd_ref)
    for b in range(block_b):
        bd_ref[b * Lp:b * Lp + L, b * Lp:b * Lp + L] = attn_ref[0, b]

    src = src_ref[0]                                                   # (C, Lb)

    # torch.bmm for the whole packed block: one dense MXU matmul, f32 accumulate.
    h = jnp.dot(src, bd_ref[...], preferred_element_type=jnp.float32)  # (C, Lb) f32

    def conv_bn_relu(x_f32, w_ref, t_ref):
        # Conv1d('same') + folded BatchNorm + ReLU, restructured as
        #     y = sum_k  mask_k * roll(W_k @ x, -offset_k)
        # so the single (K*C, C) @ (C, Lb) MXU matmul runs first and the XLU
        # rolls / VPU mask-adds operate on its (already f32) output; tap
        # assembly is no longer a serial chain in front of the MXU push.
        x = x_f32.astype(w_ref.dtype)                                  # one (C, Lb) cast
        p = jnp.dot(w_ref[...], x, preferred_element_type=jnp.float32)  # (K*C, Lb) f32
        y = p[pad * C:(pad + 1) * C, :]                                # centre tap, off = 0
        for k in range(K):
            off = k - pad
            if off == 0:
                continue
            blk = pltpu.roll(p[k * C:(k + 1) * C, :], shift=(-off) % Lb, axis=1)
            y = y + blk * mask_ref[k]                                  # (1, Lb) edge mask
        return jnp.maximum(y + t_ref[...], 0.0)                        # BN/bias shift + ReLU

    h = conv_bn_relu(h, w1_ref, t1_ref)
    h = conv_bn_relu(h, w2_ref, t2_ref)

    out_ref[0] = jnp.maximum(src.astype(jnp.float32) + h, 0.0).astype(out_ref.dtype)


# ----------------------------------------------------------------------------
# Packing heuristics / VMEM budget
# ----------------------------------------------------------------------------
def _choose_packing(batch, seq_len, *, target_lanes=256, min_steps=4):
    """Pick (block_b, pad_len) so the packed lane width block_b*pad_len is a
    multiple of 128 (lane-dense stores), close to `target_lanes` (fills the
    256-wide MXU on v6e/v7x), and -- when the batch allows -- leaves at least
    `min_steps` grid steps (>= 2 per TensorCore on v7x for pipelining)."""
    best_key, best = None, (1, seq_len)
    for d in range(1, batch + 1):
        if batch % d:
            continue
        m = 128 // math.gcd(d, 128)
        pad_len = ((seq_len + m - 1) // m) * m   # smallest pad with d*pad % 128 == 0
        lb = d * pad_len
        nb = batch // d
        waste = (pad_len - seq_len) / pad_len
        key = (lb <= target_lanes,    # don't blow past the MXU-friendly width
               waste <= 1e-6,         # prefer no padding waste
               nb >= min_steps,       # keep the grid deep enough to pipeline
               lb,                    # then as many lanes as possible
               -waste)
        if best_key is None or key > best_key:
            best_key, best = key, (d, pad_len)
    return best


def _vmem_limit_bytes(C, Lb, block_b, L, K, compute_dtype, out_dtype):
    cb = jnp.dtype(compute_dtype).itemsize
    ob = jnp.dtype(out_dtype).itemsize
    per_step = (C * Lb * cb                       # packed src block
                + block_b * L * L * cb            # raw attn blocks
                + K * Lb * 4                      # edge masks (f32)
                + 2 * (K * C * C * cb + C * 4)    # two conv weights + shifts
                + C * Lb * ob)                    # output block
    scratch = Lb * Lb * cb                        # block-diag attn scratch
    est = 2 * per_step + scratch                  # double-buffered pipeline
    # Generous headroom for compiler-internal scratch, but never the whole
    # physical VMEM (64 MiB is all of a v7x TensorCore's VMEM).
    return int(min(max(4 * est, 8 * 1024 * 1024), 32 * 1024 * 1024))


# ----------------------------------------------------------------------------
# Wrapper: batch packing, edge masks, dtype casts, pallas_call.
# ----------------------------------------------------------------------------
def residual_graph_attention(src, attn, folded_params, *, kernel_size,
                             compute_dtype=jnp.bfloat16, out_dtype=None,
                             block_b=None, pad_len=None):
    B, C, L = src.shape
    K = kernel_size
    pad = K // 2
    if K % 2 != 1:
        raise ValueError("Only odd kernel_size gives 'same' length with pad=K//2.")
    w1, t1, w2, t2 = folded_params            # w: (K*C, C) f32, t: (C, 1) f32
    out_dtype = src.dtype if out_dtype is None else out_dtype

    if block_b is None:
        block_b, auto_pad = _choose_packing(B, L)
        if pad_len is None:
            pad_len = auto_pad
    if pad_len is None:
        m = 128 // math.gcd(block_b, 128)
        pad_len = ((L + m - 1) // m) * m
    if B % block_b:
        raise ValueError("block_b must divide the batch size")
    nb = B // block_b
    Lp = pad_len
    Lb = block_b * Lp

    # Lane-dense batch packing: (B, C, L) -> (nb, C, block_b*Lp), zero-padding
    # each sequence to Lp columns so Lb is a multiple of 128.
    src4 = src.reshape(nb, block_b, C, L)
    if Lp != L:
        src4 = jnp.pad(src4, ((0, 0), (0, 0), (0, 0), (0, Lp - L)))
    src_slab = (src4.transpose(0, 2, 1, 3)
                    .reshape(nb, C, Lb)
                    .astype(compute_dtype))
    # TODO(synk): fuse this pack transpose (and the unpack below) into producers/
    #             consumers to avoid the extra HBM round trips.

    # attn stays in its raw per-sequence (L, L) form; the block-diagonal matrix
    # is assembled inside the kernel (VMEM only).
    attn_blocks = attn.reshape(nb, block_b, L, L).astype(compute_dtype)

    # Precompute the "same"-padding edge masks once (loop-invariant across grid
    # steps): mask_k[j] = 1 iff position j's source column j+off_k lies inside
    # the valid [0, L) range of its own packed sequence.
    pos = jnp.arange(Lb, dtype=jnp.int32) % Lp
    masks = []
    for k in range(K):
        off = k - pad
        masks.append(jnp.logical_and(pos + off >= 0, pos + off < L))
    mask_arr = jnp.stack(masks).astype(jnp.float32).reshape(K, 1, Lb)

    w1c = w1.astype(compute_dtype)
    w2c = w2.astype(compute_dtype)
    t1f = t1.astype(jnp.float32)
    t2f = t2.astype(jnp.float32)

    kern = functools.partial(_rga_kernel, kernel_size=K, seq_len=L,
                             pad_len=Lp, block_b=block_b)
    out_slab = pl.pallas_call(
        kern,
        out_shape=jax.ShapeDtypeStruct((nb, C, Lb), out_dtype),
        grid_spec=pltpu.PrefetchScalarGridSpec(
            num_scalar_prefetch=0,
            grid=(nb,),
            in_specs=[
                pl.BlockSpec((1, C, Lb), lambda n: (n, 0, 0)),             # packed src
                pl.BlockSpec((1, block_b, L, L), lambda n: (n, 0, 0, 0)),  # raw attn blocks
                pl.BlockSpec((K, 1, Lb), lambda n: (0, 0, 0)),             # edge masks
                pl.BlockSpec((K * C, C), lambda n: (0, 0)),                # w1 (scale-folded)
                pl.BlockSpec((C, 1), lambda n: (0, 0)),                    # shift1
                pl.BlockSpec((K * C, C), lambda n: (0, 0)),                # w2 (scale-folded)
                pl.BlockSpec((C, 1), lambda n: (0, 0)),                    # shift2
            ],
            out_specs=pl.BlockSpec((1, C, Lb), lambda n: (n, 0, 0)),
            scratch_shapes=[pltpu.VMEM((Lb, Lb), compute_dtype)],          # block-diag attn
        ),
        compiler_params=pltpu.CompilerParams(
            dimension_semantics=("parallel",),
            vmem_limit_bytes=_vmem_limit_bytes(C, Lb, block_b, L, K,
                                               compute_dtype, out_dtype),
        ),
    )(src_slab, attn_blocks, mask_arr, w1c, t1f, w2c, t2f)

    # Unpack lane-dense slab back to (B, C, L), dropping any per-sequence padding.
    out = (out_slab.reshape(nb, C, block_b, Lp)
                   .transpose(0, 2, 1, 3)
                   .reshape(B, C, Lp))
    return out[:, :, :L]


# ----------------------------------------------------------------------------
# Deterministic parameter construction + conv-bias/BN folding (plain JAX glue)
# ----------------------------------------------------------------------------
def make_conv_params(key, C, K):
    ks = jax.random.split(key, 6)
    bound = 1.0 / (C * K) ** 0.5
    w = jax.random.uniform(ks[0], (C, C, K), jnp.float32, -bound, bound)  # (Cout,Cin,K)
    b = jax.random.uniform(ks[1], (C,), jnp.float32, -bound, bound)
    gamma = jax.random.uniform(ks[2], (C,), jnp.float32, 0.5, 1.5)
    beta = jax.random.uniform(ks[3], (C,), jnp.float32, -0.5, 0.5)
    mean = jax.random.uniform(ks[4], (C,), jnp.float32, -0.1, 0.1)
    var = jax.random.uniform(ks[5], (C,), jnp.float32, 0.5, 1.5)
    return w, b, gamma, beta, mean, var


def fold_conv_bn(w, b, gamma, beta, mean, var, eps=1e-5):
    # Fold inference BatchNorm + conv bias into (tall tap-major weight, shift):
    #   y = sum_k (scale * W_k) @ x_shift_k + shift,  scale = gamma / sqrt(var+eps)
    Cout, Cin, K = w.shape
    scale = gamma / jnp.sqrt(var + eps)
    shift = beta - mean * scale + b * scale
    w_scaled = w * scale[:, None, None]                                  # (Cout, Cin, K)
    w_tall = jnp.transpose(w_scaled, (2, 0, 1)).reshape(K * Cout, Cin)   # tap-major rows
    return w_tall, shift.reshape(Cout, 1)


# ----------------------------------------------------------------------------
# Pure-JAX reference for verification
# ----------------------------------------------------------------------------
def _conv_bn_relu_ref(x, w, b, gamma, beta, mean, var, eps=1e-5):
    K = w.shape[-1]
    pad = K // 2
    y = jax.lax.conv_general_dilated(
        x, w, window_strides=(1,), padding=[(pad, pad)],
        dimension_numbers=("NCH", "OIH", "NCH"))
    y = y + b[None, :, None]
    y = (y - mean[None, :, None]) / jnp.sqrt(var[None, :, None] + eps)
    y = y * gamma[None, :, None] + beta[None, :, None]
    return jnp.maximum(y, 0.0)


def rga_ref(src, attn, p1, p2):
    h = jnp.einsum("bcl,blm->bcm", src, attn)
    h = _conv_bn_relu_ref(h, *p1)
    h = _conv_bn_relu_ref(h, *p2)
    return jnp.maximum(src + h, 0.0)


# ----------------------------------------------------------------------------
if __name__ == "__main__":
    # block_b=16 -> 256-lane slabs (fills the 256-wide MXU on v6e/v7x) and a
    # 4-step grid (>= 2 steps per TensorCore on v7x so the pipeline overlaps).
    B, d_model, L, K = 64, 32, 16, 3

    key = jax.random.PRNGKey(0)
    k_src, k_attn, k_c1, k_c2 = jax.random.split(key, 4)

    src = jax.random.normal(k_src, (B, d_model, L), jnp.float32)
    attn = jax.nn.softmax(jax.random.normal(k_attn, (B, L, L), jnp.float32), axis=-1)

    p1 = make_conv_params(k_c1, d_model, K)
    p2 = make_conv_params(k_c2, d_model, K)
    folded = fold_conv_bn(*p1) + fold_conv_bn(*p2)

    ref = jax.block_until_ready(rga_ref(src, attn, p1, p2))

    # f32 compute path (tight tolerance).
    out_f32 = jax.block_until_ready(
        residual_graph_attention(src, attn, folded, kernel_size=K,
                                 compute_dtype=jnp.float32))
    assert out_f32.shape == (B, d_model, L)
    assert jnp.allclose(out_f32, ref, atol=1e-3, rtol=1e-3), "f32 mismatch vs reference"

    # Default bf16 MXU path (looser tolerance, f32 accumulation).
    out_bf16 = jax.block_until_ready(
        residual_graph_attention(src, attn, folded, kernel_size=K))
    assert out_bf16.shape == (B, d_model, L)
    assert jnp.allclose(out_bf16, ref, atol=7e-2, rtol=7e-2), "bf16 mismatch vs reference"

    print("KERNEL_OK")
</pallas_src>

<mosaic_0001>
module attributes {stable_mosaic.version = 11 : i64} {
  func.func @_rga_kernel(%arg0: i32, %arg1: memref<1x32x256xf32, #tpu.memory_space<vmem>>, %arg2: memref<1x16x16x16xf32, #tpu.memory_space<vmem>>, %arg3: memref<3x1x256xf32, #tpu.memory_space<vmem>>, %arg4: memref<96x32xf32, #tpu.memory_space<vmem>>, %arg5: memref<32x1xf32, #tpu.memory_space<vmem>>, %arg6: memref<96x32xf32, #tpu.memory_space<vmem>>, %arg7: memref<32x1xf32, #tpu.memory_space<vmem>>, %arg8: memref<1x32x256xf32, #tpu.memory_space<vmem>>, %arg9: memref<256x256xf32, #tpu.memory_space<vmem>>) attributes {dimension_semantics = [#tpu.dimension_semantics<parallel>], iteration_bounds = array<i64: 4>, scalar_prefetch = 0 : i64, scratch_operands = 1 : i64, tpu.core_type = #tpu.core_type<tc>, window_params = [{transform_indices = @transform_0, window_bounds = array<i64: 1, 32, 256>}, {transform_indices = @transform_1, window_bounds = array<i64: 1, 16, 16, 16>}, {pipeline_mode = #tpu.pipeline_mode<synchronous>, transform_indices = @transform_2, window_bounds = array<i64: 3, 1, 256>}, {pipeline_mode = #tpu.pipeline_mode<synchronous>, transform_indices = @transform_3, window_bounds = array<i64: 96, 32>}, {pipeline_mode = #tpu.pipeline_mode<synchronous>, transform_indices = @transform_4, window_bounds = array<i64: 32, 1>}, {pipeline_mode = #tpu.pipeline_mode<synchronous>, transform_indices = @transform_5, window_bounds = array<i64: 96, 32>}, {pipeline_mode = #tpu.pipeline_mode<synchronous>, transform_indices = @transform_6, window_bounds = array<i64: 32, 1>}, {transform_indices = @transform_7, window_bounds = array<i64: 1, 32, 256>}]} {
    %cst = arith.constant 0.000000e+00 : f32
    %0 = vector.broadcast %cst : f32 to vector<256x256xf32>
    %c0 = arith.constant 0 : index
    %c0_0 = arith.constant 0 : index
    %1 = vector.load %arg9[%c0, %c0_0] : memref<256x256xf32, #tpu.memory_space<vmem>>, vector<256x256xf32>
    tpu.vector_store %arg9[%c0, %c0_0], %0 {strides = array<i32>} : memref<256x256xf32, #tpu.memory_space<vmem>>, vector<256x256xf32>,
    %c0_1 = arith.constant 0 : index
    %c0_2 = arith.constant 0 : index
    %c0_3 = arith.constant 0 : index
    %c0_4 = arith.constant 0 : index
    %2 = vector.load %arg2[%c0_1, %c0_2, %c0_3, %c0_4] : memref<1x16x16x16xf32, #tpu.memory_space<vmem>>, vector<1x1x16x16xf32>
    %3 = vector.shape_cast %2 : vector<1x1x16x16xf32> to vector<16x16xf32>
    %c0_5 = arith.constant 0 : index
    %c0_6 = arith.constant 0 : index
    %4 = vector.load %arg9[%c0_5, %c0_6] : memref<256x256xf32, #tpu.memory_space<vmem>>, vector<16x16xf32>
    tpu.vector_store %arg9[%c0_5, %c0_6], %3 {strides = array<i32>} : memref<256x256xf32, #tpu.memory_space<vmem>>, vector<16x16xf32>,
    %c0_7 = arith.constant 0 : index
    %c1 = arith.constant 1 : index
    %c0_8 = arith.constant 0 : index
    %c0_9 = arith.constant 0 : index
    %5 = vector.load %arg2[%c0_7, %c1, %c0_8, %c0_9] : memref<1x16x16x16xf32, #tpu.memory_space<vmem>>, vector<1x1x16x16xf32>
    %6 = vector.shape_cast %5 : vector<1x1x16x16xf32> to vector<16x16xf32>
    %c16 = arith.constant 16 : index
    %c16_10 = arith.constant 16 : index
    %7 = vector.load %arg9[%c16, %c16_10] : memref<256x256xf32, #tpu.memory_space<vmem>>, vector<16x16xf32>
    tpu.vector_store %arg9[%c16, %c16_10], %6 {strides = array<i32>} : memref<256x256xf32, #tpu.memory_space<vmem>>, vector<16x16xf32>,
    %c0_11 = arith.constant 0 : index
    %c2 = arith.constant 2 : index
    %c0_12 = arith.constant 0 : index
    %c0_13 = arith.constant 0 : index
    %8 = vector.load %arg2[%c0_11, %c2, %c0_12, %c0_13] : memref<1x16x16x16xf32, #tpu.memory_space<vmem>>, vector<1x1x16x16xf32>
    %9 = vector.shape_cast %8 : vector<1x1x16x16xf32> to vector<16x16xf32>
    %c32 = arith.constant 32 : index
    %c32_14 = arith.constant 32 : index
    %10 = vector.load %arg9[%c32, %c32_14] : memref<256x256xf32, #tpu.memory_space<vmem>>, vector<16x16xf32>
    tpu.vector_store %arg9[%c32, %c32_14], %9 {strides = array<i32>} : memref<256x256xf32, #tpu.memory_space<vmem>>, vector<16x16xf32>,
    %c0_15 = arith.constant 0 : index
    %c3 = arith.constant 3 : index
    %c0_16 = arith.constant 0 : index
    %c0_17 = arith.constant 0 : index
    %11 = vector.load %arg2[%c0_15, %c3, %c0_16, %c0_17] : memref<1x16x16x16xf32, #tpu.memory_space<vmem>>, vector<1x1x16x16xf32>
    %12 = vector.shape_cast %11 : vector<1x1x16x16xf32> to vector<16x16xf32>
    %c48 = arith.constant 48 : index
    %c48_18 = arith.constant 48 : index
    %13 = vector.load %arg9[%c48, %c48_18] : memref<256x256xf32, #tpu.memory_space<vmem>>, vector<16x16xf32>
    tpu.vector_store %arg9[%c48, %c48_18], %12 {strides = array<i32>} : memref<256x256xf32, #tpu.memory_space<vmem>>, vector<16x16xf32>,
    %c0_19 = arith.constant 0 : index
    %c4 = arith.constant 4 : index
    %c0_20 = arith.constant 0 : index
    %c0_21 = arith.constant 0 : index
    %14 = vector.load %arg2[%c0_19, %c4, %c0_20, %c0_21] : memref<1x16x16x16xf32, #tpu.memory_space<vmem>>, vector<1x1x16x16xf32>
    %15 = vector.shape_cast %14 : vector<1x1x16x16xf32> to vector<16x16xf32>
    %c64 = arith.constant 64 : index
    %c64_22 = arith.constant 64 : index
    %16 = vector.load %arg9[%c64, %c64_22] : memref<256x256xf32, #tpu.memory_space<vmem>>, vector<16x16xf32>
    tpu.vector_store %arg9[%c64, %c64_22], %15 {strides = array<i32>} : memref<256x256xf32, #tpu.memory_space<vmem>>, vector<16x16xf32>,
    %c0_23 = arith.constant 0 : index
    %c5 = arith.constant 5 : index
    %c0_24 = arith.constant 0 : index
    %c0_25 = arith.constant 0 : index
    %17 = vector.load %arg2[%c0_23, %c5, %c0_24, %c0_25] : memref<1x16x16x16xf32, #tpu.memory_space<vmem>>, vector<1x1x16x16xf32>
    %18 = vector.shape_cast %17 : vector<1x1x16x16xf32> to vector<16x16xf32>
    %c80 = arith.constant 80 : index
    %c80_26 = arith.constant 80 : index
    %19 = vector.load %arg9[%c80, %c80_26] : memref<256x256xf32, #tpu.memory_space<vmem>>, vector<16x16xf32>
    tpu.vector_store %arg9[%c80, %c80_26], %18 {strides = array<i32>} : memref<256x256xf32, #tpu.memory_space<vmem>>, vector<16x16xf32>,
    %c0_27 = arith.constant 0 : index
    %c6 = arith.constant 6 : index
    %c0_28 = arith.constant 0 : index
    %c0_29 = arith.constant 0 : index
    %20 = vector.load %arg2[%c0_27, %c6, %c0_28, %c0_29] : memref<1x16x16x16xf32, #tpu.memory_space<vmem>>, vector<1x1x16x16xf32>
    %21 = vector.shape_cast %20 : vector<1x1x16x16xf32> to vector<16x16xf32>
    %c96 = arith.constant 96 : index
    %c96_30 = arith.constant 96 : index
    %22 = vector.load %arg9[%c96, %c96_30] : memref<256x256xf32, #tpu.memory_space<vmem>>, vector<16x16xf32>
    tpu.vector_store %arg9[%c96, %c96_30], %21 {strides = array<i32>} : memref<256x256xf32, #tpu.memory_space<vmem>>, vector<16x16xf32>,
    %c0_31 = arith.constant 0 : index
    %c7 = arith.constant 7 : index
    %c0_32 = arith.constant 0 : index
    %c0_33 = arith.constant 0 : index
    %23 = vector.load %arg2[%c0_31, %c7, %c0_32, %c0_33] : memref<1x16x16x16xf32, #tpu.memory_space<vmem>>, vector<1x1x16x16xf32>
    %24 = vector.shape_cast %23 : vector<1x1x16x16xf32> to vector<16x16xf32>
    %c112 = arith.constant 112 : index
    %c112_34 = arith.constant 112 : index
    %25 = vector.load %arg9[%c112, %c112_34] : memref<256x256xf32, #tpu.memory_space<vmem>>, vector<16x16xf32>
    tpu.vector_store %arg9[%c112, %c112_34], %24 {strides = array<i32>} : memref<256x256xf32, #tpu.memory_space<vmem>>, vector<16x16xf32>,
    %c0_35 = arith.constant 0 : index
    %c8 = arith.constant 8 : index
    %c0_36 = arith.constant 0 : index
    %c0_37 = arith.constant 0 : index
    %26 = vector.load %arg2[%c0_35, %c8, %c0_36, %c0_37] : memref<1x16x16x16xf32, #tpu.memory_space<vmem>>, vector<1x1x16x16xf32>
    %27 = vector.shape_cast %26 : vector<1x1x16x16xf32> to vector<16x16xf32>
    %c128 = arith.constant 128 : index
    %c128_38 = arith.constant 128 : index
    %28 = vector.load %arg9[%c128, %c128_38] : memref<256x256xf32, #tpu.memory_space<vmem>>, vector<16x16xf32>
    tpu.vector_store %arg9[%c128, %c128_38], %27 {strides = array<i32>} : memref<256x256xf32, #tpu.memory_space<vmem>>, vector<16x16xf32>,
    %c0_39 = arith.constant 0 : index
    %c9 = arith.constant 9 : index
    %c0_40 = arith.constant 0 : index
    %c0_41 = arith.constant 0 : index
    %29 = vector.load %arg2[%c0_39, %c9, %c0_40, %c0_41] : memref<1x16x16x16xf32, #tpu.memory_space<vmem>>, vector<1x1x16x16xf32>
    %30 = vector.shape_cast %29 : vector<1x1x16x16xf32> to vector<16x16xf32>
    %c144 = arith.constant 144 : index
    %c144_42 = arith.constant 144 : index
    %31 = vector.load %arg9[%c144, %c144_42] : memref<256x256xf32, #tpu.memory_space<vmem>>, vector<16x16xf32>
    tpu.vector_store %arg9[%c144, %c144_42], %30 {strides = array<i32>} : memref<256x256xf32, #tpu.memory_space<vmem>>, vector<16x16xf32>,
    %c0_43 = arith.constant 0 : index
    %c10 = arith.constant 10 : index
    %c0_44 = arith.constant 0 : index
    %c0_45 = arith.constant 0 : index
    %32 = vector.load %arg2[%c0_43, %c10, %c0_44, %c0_45] : memref<1x16x16x16xf32, #tpu.memory_space<vmem>>, vector<1x1x16x16xf32>
    %33 = vector.shape_cast %32 : vector<1x1x16x16xf32> to vector<16x16xf32>
    %c160 = arith.constant 160 : index
    %c160_46 = arith.constant 160 : index
    %34 = vector.load %arg9[%c160, %c160_46] : memref<256x256xf32, #tpu.memory_space<vmem>>, vector<16x16xf32>
    tpu.vector_store %arg9[%c160, %c160_46], %33 {strides = array<i32>} : memref<256x256xf32, #tpu.memory_space<vmem>>, vector<16x16xf32>,
    %c0_47 = arith.constant 0 : index
    %c11 = arith.constant 11 : index
    %c0_48 = arith.constant 0 : index
    %c0_49 = arith.constant 0 : index
    %35 = vector.load %arg2[%c0_47, %c11, %c0_48, %c0_49] : memref<1x16x16x16xf32, #tpu.memory_space<vmem>>, vector<1x1x16x16xf32>
    %36 = vector.shape_cast %35 : vector<1x1x16x16xf32> to vector<16x16xf32>
    %c176 = arith.constant 176 : index
    %c176_50 = arith.constant 176 : index
    %37 = vector.load %arg9[%c176, %c176_50] : memref<256x256xf32, #tpu.memory_space<vmem>>, vector<16x16xf32>
    tpu.vector_store %arg9[%c176, %c176_50], %36 {strides = array<i32>} : memref<256x256xf32, #tpu.memory_space<vmem>>, vector<16x16xf32>,
    %c0_51 = arith.constant 0 : index
    %c12 = arith.constant 12 : index
    %c0_52 = arith.constant 0 : index
    %c0_53 = arith.constant 0 : index
    %38 = vector.load %arg2[%c0_51, %c12, %c0_52, %c0_53] : memref<1x16x16x16xf32, #tpu.memory_space<vmem>>, vector<1x1x16x16xf32>
    %39 = vector.shape_cast %38 : vector<1x1x16x16xf32> to vector<16x16xf32>
    %c192 = arith.constant 192 : index
    %c192_54 = arith.constant 192 : index
    %40 = vector.load %arg9[%c192, %c192_54] : memref<256x256xf32, #tpu.memory_space<vmem>>, vector<16x16xf32>
    tpu.vector_store %arg9[%c192, %c192_54], %39 {strides = array<i32>} : memref<256x256xf32, #tpu.memory_space<vmem>>, vector<16x16xf32>,
    %c0_55 = arith.constant 0 : index
    %c13 = arith.constant 13 : index
    %c0_56 = arith.constant 0 : index
    %c0_57 = arith.constant 0 : index
    %41 = vector.load %arg2[%c0_55, %c13, %c0_56, %c0_57] : memref<1x16x16x16xf32, #tpu.memory_space<vmem>>, vector<1x1x16x16xf32>
    %42 = vector.shape_cast %41 : vector<1x1x16x16xf32> to vector<16x16xf32>
    %c208 = arith.constant 208 : index
    %c208_58 = arith.constant 208 : index
    %43 = vector.load %arg9[%c208, %c208_58] : memref<256x256xf32, #tpu.memory_space<vmem>>, vector<16x16xf32>
    tpu.vector_store %arg9[%c208, %c208_58], %42 {strides = array<i32>} : memref<256x256xf32, #tpu.memory_space<vmem>>, vector<16x16xf32>,
    %c0_59 = arith.constant 0 : index
    %c14 = arith.constant 14 : index
    %c0_60 = arith.constant 0 : index
    %c0_61 = arith.constant 0 : index
    %44 = vector.load %arg2[%c0_59, %c14, %c0_60, %c0_61] : memref<1x16x16x16xf32, #tpu.memory_space<vmem>>, vector<1x1x16x16xf32>
    %45 = vector.shape_cast %44 : vector<1x1x16x16xf32> to vector<16x16xf32>
    %c224 = arith.constant 224 : index
    %c224_62 = arith.constant 224 : index
    %46 = vector.load %arg9[%c224, %c224_62] : memref<256x256xf32, #tpu.memory_space<vmem>>, vector<16x16xf32>
    tpu.vector_store %arg9[%c224, %c224_62], %45 {strides = array<i32>} : memref<256x256xf32, #tpu.memory_space<vmem>>, vector<16x16xf32>,
    %c0_63 = arith.constant 0 : index
    %c15 = arith.constant 15 : index
    %c0_64 = arith.constant 0 : index
    %c0_65 = arith.constant 0 : index
    %47 = vector.load %arg2[%c0_63, %c15, %c0_64, %c0_65] : memref<1x16x16x16xf32, #tpu.memory_space<vmem>>, vector<1x1x16x16xf32>
    %48 = vector.shape_cast %47 : vector<1x1x16x16xf32> to vector<16x16xf32>
    %c240 = arith.constant 240 : index
    %c240_66 = arith.constant 240 : index
    %49 = vector.load %arg9[%c240, %c240_66] : memref<256x256xf32, #tpu.memory_space<vmem>>, vector<16x16xf32>
    tpu.vector_store %arg9[%c240, %c240_66], %48 {strides = array<i32>} : memref<256x256xf32, #tpu.memory_space<vmem>>, vector<16x16xf32>,
    %c0_67 = arith.constant 0 : index
    %c0_68 = arith.constant 0 : index
    %c0_69 = arith.constant 0 : index
    %50 = vector.load %arg1[%c0_67, %c0_68, %c0_69] : memref<1x32x256xf32, #tpu.memory_space<vmem>>, vector<1x32x256xf32>
    %51 = vector.shape_cast %50 : vector<1x32x256xf32> to vector<32x256xf32>
    %c0_70 = arith.constant 0 : index
    %c0_71 = arith.constant 0 : index
    %52 = vector.load %arg9[%c0_70, %c0_71] : memref<256x256xf32, #tpu.memory_space<vmem>>, vector<256x256xf32>
    %cst_72 = arith.constant dense<0.000000e+00> : vector<32x256xf32>
    %53 = tpu.matmul %51, %52, %cst_72 {dimension_numbers = #tpu.dot_dimension_numbers<[1], [0], [0], [1], [0, 0, 1, 1], [], []>} : vector<32x256xf32>, vector<256x256xf32>, vector<32x256xf32> -> vector<32x256xf32>
    %c0_73 = arith.constant 0 : index
    %c0_74 = arith.constant 0 : index
    %54 = vector.load %arg4[%c0_73, %c0_74] : memref<96x32xf32, #tpu.memory_space<vmem>>, vector<96x32xf32>
    %cst_75 = arith.constant dense<0.000000e+00> : vector<96x256xf32>
    %55 = tpu.matmul %54, %53, %cst_75 {dimension_numbers = #tpu.dot_dimension_numbers<[1], [0], [0], [1], [0, 0, 1, 1], [], []>} : vector<96x32xf32>, vector<32x256xf32>, vector<96x256xf32> -> vector<96x256xf32>
    %56 = vector.extract_strided_slice %55 {offsets = [32, 0], sizes = [32, 256], strides = [1, 1]} : vector<96x256xf32> to vector<32x256xf32>
    %57 = vector.extract_strided_slice %55 {offsets = [0, 0], sizes = [32, 256], strides = [1, 1]} : vector<96x256xf32> to vector<32x256xf32>
    %c1_i32 = arith.constant 1 : i32
    %58 = tpu.dynamic_rotate %57 by %c1_i32 dim 1 : vector<32x256xf32>, i32 -> vector<32x256xf32>
    %c0_76 = arith.constant 0 : index
    %c0_77 = arith.constant 0 : index
    %c0_78 = arith.constant 0 : index
    %59 = vector.load %arg3[%c0_76, %c0_77, %c0_78] : memref<3x1x256xf32, #tpu.memory_space<vmem>>, vector<1x1x256xf32>
    %60 = vector.shape_cast %59 : vector<1x1x256xf32> to vector<1x256xf32>
    %61 = vector.broadcast %60 : vector<1x256xf32> to vector<32x256xf32>
    %62 = arith.mulf %58, %61 : vector<32x256xf32>
    %63 = arith.addf %56, %62 : vector<32x256xf32>
    %64 = vector.extract_strided_slice %55 {offsets = [64, 0], sizes = [32, 256], strides = [1, 1]} : vector<96x256xf32> to vector<32x256xf32>
    %c255_i32 = arith.constant 255 : i32
    %65 = tpu.dynamic_rotate %64 by %c255_i32 dim 1 : vector<32x256xf32>, i32 -> vector<32x256xf32>
    %c2_79 = arith.constant 2 : index
    %c0_80 = arith.constant 0 : index
    %c0_81 = arith.constant 0 : index
    %66 = vector.load %arg3[%c2_79, %c0_80, %c0_81] : memref<3x1x256xf32, #tpu.memory_space<vmem>>, vector<1x1x256xf32>
    %67 = vector.shape_cast %66 : vector<1x1x256xf32> to vector<1x256xf32>
    %68 = vector.broadcast %67 : vector<1x256xf32> to vector<32x256xf32>
    %69 = arith.mulf %65, %68 : vector<32x256xf32>
    %70 = arith.addf %63, %69 : vector<32x256xf32>
    %c0_82 = arith.constant 0 : index
    %c0_83 = arith.constant 0 : index
    %71 = vector.load %arg5[%c0_82, %c0_83] : memref<32x1xf32, #tpu.memory_space<vmem>>, vector<32x1xf32>
    %72 = vector.broadcast %71 : vector<32x1xf32> to vector<32x256xf32>
    %73 = arith.addf %70, %72 : vector<32x256xf32>
    %cst_84 = arith.constant 0.000000e+00 : f32
    %74 = vector.broadcast %cst_84 : f32 to vector<32x256xf32>
    %75 = arith.maximumf %73, %74 : vector<32x256xf32>
    %c0_85 = arith.constant 0 : index
    %c0_86 = arith.constant 0 : index
    %76 = vector.load %arg6[%c0_85, %c0_86] : memref<96x32xf32, #tpu.memory_space<vmem>>, vector<96x32xf32>
    %cst_87 = arith.constant dense<0.000000e+00> : vector<96x256xf32>
    %77 = tpu.matmul %76, %75, %cst_87 {dimension_numbers = #tpu.dot_dimension_numbers<[1], [0], [0], [1], [0, 0, 1, 1], [], []>} : vector<96x32xf32>, vector<32x256xf32>, vector<96x256xf32> -> vector<96x256xf32>
    %78 = vector.extract_strided_slice %77 {offsets = [32, 0], sizes = [32, 256], strides = [1, 1]} : vector<96x256xf32> to vector<32x256xf32>
    %79 = vector.extract_strided_slice %77 {offsets = [0, 0], sizes = [32, 256], strides = [1, 1]} : vector<96x256xf32> to vector<32x256xf32>
    %c1_i32_88 = arith.constant 1 : i32
    %80 = tpu.dynamic_rotate %79 by %c1_i32_88 dim 1 : vector<32x256xf32>, i32 -> vector<32x256xf32>
    %c0_89 = arith.constant 0 : index
    %c0_90 = arith.constant 0 : index
    %c0_91 = arith.constant 0 : index
    %81 = vector.load %arg3[%c0_89, %c0_90, %c0_91] : memref<3x1x256xf32, #tpu.memory_space<vmem>>, vector<1x1x256xf32>
    %82 = vector.shape_cast %81 : vector<1x1x256xf32> to vector<1x256xf32>
    %83 = vector.broadcast %82 : vector<1x256xf32> to vector<32x256xf32>
    %84 = arith.mulf %80, %83 : vector<32x256xf32>
    %85 = arith.addf %78, %84 : vector<32x256xf32>
    %86 = vector.extract_strided_slice %77 {offsets = [64, 0], sizes = [32, 256], strides = [1, 1]} : vector<96x256xf32> to vector<32x256xf32>
    %c255_i32_92 = arith.constant 255 : i32
    %87 = tpu.dynamic_rotate %86 by %c255_i32_92 dim 1 : vector<32x256xf32>, i32 -> vector<32x256xf32>
    %c2_93 = arith.constant 2 : index
    %c0_94 = arith.constant 0 : index
    %c0_95 = arith.constant 0 : index
    %88 = vector.load %arg3[%c2_93, %c0_94, %c0_95] : memref<3x1x256xf32, #tpu.memory_space<vmem>>, vector<1x1x256xf32>
    %89 = vector.shape_cast %88 : vector<1x1x256xf32> to vector<1x256xf32>
    %90 = vector.broadcast %89 : vector<1x256xf32> to vector<32x256xf32>
    %91 = arith.mulf %87, %90 : vector<32x256xf32>
    %92 = arith.addf %85, %91 : vector<32x256xf32>
    %c0_96 = arith.constant 0 : index
    %c0_97 = arith.constant 0 : index
    %93 = vector.load %arg7[%c0_96, %c0_97] : memref<32x1xf32, #tpu.memory_space<vmem>>, vector<32x1xf32>
    %94 = vector.broadcast %93 : vector<32x1xf32> to vector<32x256xf32>
    %95 = arith.addf %92, %94 : vector<32x256xf32>
    %cst_98 = arith.constant 0.000000e+00 : f32
    %96 = vector.broadcast %cst_98 : f32 to vector<32x256xf32>
    %97 = arith.maximumf %95, %96 : vector<32x256xf32>
    %98 = arith.addf %51, %97 : vector<32x256xf32>
    %cst_99 = arith.constant 0.000000e+00 : f32
    %99 = vector.broadcast %cst_99 : f32 to vector<32x256xf32>
    %100 = arith.maximumf %98, %99 : vector<32x256xf32>
    %c0_100 = arith.constant 0 : index
    %c0_101 = arith.constant 0 : index
    %c0_102 = arith.constant 0 : index
    %101 = vector.load %arg8[%c0_100, %c0_101, %c0_102] : memref<1x32x256xf32, #tpu.memory_space<vmem>>, vector<1x32x256xf32>
    %102 = vector.shape_cast %101 : vector<1x32x256xf32> to vector<32x256xf32>
    %103 = vector.shape_cast %100 : vector<32x256xf32> to vector<1x32x256xf32>
    tpu.vector_store %arg8[%c0_100, %c0_101, %c0_102], %103 {strides = array<i32>} : memref<1x32x256xf32, #tpu.memory_space<vmem>>, vector<1x32x256xf32>,
    return
  }
  func.func @transform_0(%arg0: i32) -> (i32, i32, i32) {
    %c0_i32 = arith.constant 0 : i32
    %c0_i32_0 = arith.constant 0 : i32
    %c0_i32_1 = arith.constant 0 : i32
    return %arg0, %c0_i32, %c0_i32_0 : i32, i32, i32
  }
  func.func @transform_1(%arg0: i32) -> (i32, i32, i32, i32) {
    %c0_i32 = arith.constant 0 : i32
    %c0_i32_0 = arith.constant 0 : i32
    %c0_i32_1 = arith.constant 0 : i32
    %c0_i32_2 = arith.constant 0 : i32
    return %arg0, %c0_i32, %c0_i32_0, %c0_i32_1 : i32, i32, i32, i32
  }
  func.func @transform_2(%arg0: i32) -> (i32, i32, i32) {
    %c0_i32 = arith.constant 0 : i32
    %c0_i32_0 = arith.constant 0 : i32
    %c0_i32_1 = arith.constant 0 : i32
    %c0_i32_2 = arith.constant 0 : i32
    return %c0_i32, %c0_i32_0, %c0_i32_1 : i32, i32, i32
  }
  func.func @transform_3(%arg0: i32) -> (i32, i32) {
    %c0_i32 = arith.constant 0 : i32
    %c0_i32_0 = arith.constant 0 : i32
    %c0_i32_1 = arith.constant 0 : i32
    return %c0_i32, %c0_i32_0 : i32, i32
  }
  func.func @transform_4(%arg0: i32) -> (i32, i32) {
    %c0_i32 = arith.constant 0 : i32
    %c0_i32_0 = arith.constant 0 : i32
    %c0_i32_1 = arith.constant 0 : i32
    return %c0_i32, %c0_i32_0 : i32, i32
  }
  func.func @transform_5(%arg0: i32) -> (i32, i32) {
    %c0_i32 = arith.constant 0 : i32
    %c0_i32_0 = arith.constant 0 : i32
    %c0_i32_1 = arith.constant 0 : i32
    return %c0_i32, %c0_i32_0 : i32, i32
  }
  func.func @transform_6(%arg0: i32) -> (i32, i32) {
    %c0_i32 = arith.constant 0 : i32
    %c0_i32_0 = arith.constant 0 : i32
    %c0_i32_1 = arith.constant 0 : i32
    return %c0_i32, %c0_i32_0 : i32, i32
  }
  func.func @transform_7(%arg0: i32) -> (i32, i32, i32) {
    %c0_i32 = arith.constant 0 : i32
    %c0_i32_0 = arith.constant 0 : i32
    %c0_i32_1 = arith.constant 0 : i32
    return %arg0, %c0_i32, %c0_i32_0 : i32, i32, i32
  }
}

</mosaic_0001>

<bundles_post_ra>
// kernel: tpu_custom_call.1
= control target key start
LH: loop header
LB: loop body
LE: loop exit
PB: predicated region body
PF: predicated region fallthrough
CT: control target
= control target key end

     0   :  { %s2553_s0 = inlined_call_operand.hbm [shape: f32[4,32,256], index: 0, kind: input, shape index: {}]   ;;  %s2554_s1 = inlined_call_operand.hbm [shape: f32[4,16,16,16], index: 1, kind: input, shape index: {}]   ;;  %s2555_s2 = inlined_call_operand.vmem [shape: f32[3,1,256], index: 2, kind: input, shape index: {}]   ;;  %s2556_s3 = inlined_call_operand.vmem [shape: f32[96,32], index: 3, kind: input, shape index: {}]   ;;  %s2557_s4 = inlined_call_operand.vmem [shape: f32[32,1], index: 4, kind: input, shape index: {}]   ;;  %s2558_s5 = inlined_call_operand.vmem [shape: f32[96,32], index: 5, kind: input, shape index: {}]   ;;  %s2559_s6 = inlined_call_operand.vmem [shape: f32[32,1], index: 6, kind: input, shape index: {}]   ;;  %s2560_s7 = inlined_call_operand.hbm [shape: f32[4,32,256], index: 7, kind: output, shape index: {}]  }
   0x1   :  { %2565 = sst [smem:[#allocation16_spill]] %s2553_s0 }
   0x2   :  { %12 = vsyncpa [#allocation4], 0 }
   0x3   :  { %14 = vsyncpa [#allocation4 + $0x1], 0 }
   0x4   :  { %15 = vsyncpa [#allocation7], 0 }
   0x5   :  { %17 = vsyncpa [#allocation7 + $0x1], 0 }
   0x6   :  { %18 = vsyncpa [#allocation5], 0 }
   0x7   :  { %20 = vsyncpa [#allocation5 + $0x1], 0  ;;  %s1852_s24 = smov 0   ;;  %s1854_s25 = smov 0  }
   0x8   :  { %s1856_s26 = smov 0   ;;  %s1858_s27 = smov 0  }
   0x9 LB: > { %2566 = sst [smem:[#allocation12_spill]] %s1790_s26  ;;  %s1873_s28 = sadd.s32 4294967295, %s1794_s27   ;;  %s1794_s27 = sphi %s1858_s27, %s2578_s27   ;;  %s1790_s26 = sphi %s1856_s26, %s2580_s26   ;;  %s1786_s25 = sphi %s1854_s25, %s2582_s25   ;;  %s1782_s24 = sphi %s1852_s24, %s2581_s24  }
   0xa   : > { %s1494_s29 = sadd.s32 4294967294, %s1794_s27   ;;  %s1877_s30 = sadd.s32 1, %s1794_s27  }
   0xb   : > { %2567 = sst [smem:[#allocation13_spill]] %s1877_s30  ;;  %s33_s8 = sadd.s32 1, %s1790_s26 }
   0xc   : > { %s30_s9 = ssub.s32 %s1794_s27, %s1877_s30  ;;  %p40_p0 = scmp.ne.s32.totalorder %s1790_s26, %s1786_s25 }
   0xd   : > { %p31_p1 = scmp.eq.s32.totalorder %s30_s9, 0  ;;  %p41_p2 = scmp.eq.s32.totalorder %s1794_s27, 0 }
   0xe   : > { %p46_p3 = scmp.ne.s32.totalorder %s1786_s25, %s1782_s24  ;;  %p47_p4 = scmp.eq.s32.totalorder %s1873_s28, 0 }
   0xf   : > { %s1889_s10 = scalar_select %p31_p1, %s1790_s26, %s33_s8  }
  0x10   : > { %p1891_p5 = por %p41_p2, %p40_p0  ;;  %p1895_p6 = por %p47_p4, %p46_p3 }
  0x11   : > { %2568 = sst [smem:[#allocation14_spill]] %s1889_s10  ;;  %p201_p7 = scmp.eq.s32.totalorder %s1873_s28, 3 }
  0x12   : > { %p207_p8 = scmp.eq.s32.totalorder %s1494_s29, 3  ;;  %p1611_p9 = scmp.lt.s32.totalorder %s1794_s27, 4 }
  0x13   : > { %p1901_p10 = por %p201_p7, %p40_p0  ;;  %s1910_s15 = sand.u32 1, %s1790_s26  }
  0x14   : > { %p1905_p11 = por %p207_p8, %p46_p3  ;;  %s1591_s16 = sshll.u32 %s1794_s27, 6 }
  0x15   : > { %s1497_s17 = sshll.u32 %s1910_s15, 6  ;;  %s2574_s0 = sld [smem:[#allocation16_spill]] }
  0x16   : > { %s2572_s14 = scalar_select %p1905_p11, 1, 0 }
  0x17   : > { %s246_s22 = scalar_lea.vmem [#allocation3], %s1497_s17  ;;  %p1919_p12 = pnand %p1611_p9, %p1891_p5 }
  0x18   : > { %2573 = sst [smem:[#allocation15_spill]] %s2572_s14  ;;  %s254_s23 = sshll.u32 %s246_s22, 4  ;;  %s255_s23 = int_to_ptr.vmem [resolvable:$true] %s254_s23 }
  0x19   : > { %p1503_p13 = scmp.ge.s32.totalorder %s1794_s27, 1  ;;  %p284_p0 = scmp.lt.s32.totalorder %s1794_s27, 5 }
  0x1a   : > { %s243_s8 = scalar_lea.sflag [#allocation4], %s1910_s15  ;;  %p1668_p2 = pneg %p1919_p12 }
  0x1b   : > { %s251_s20 = scalar_lea.hbm %s2574_s0, %s1591_s16  ;;  %s1671_s17 = scalar_lea.hbm %s2574_s0, 256 }
  0x1c   : > { %s252_s21 = sshll.u32 %s251_s20, 4  ;;  %s253_s21 = int_to_ptr.hbm [resolvable:$true] %s252_s21 }
  0x1d   : > { %s1664_s9 = sshra.s32 %s253_s21, 4  ;;  %s1665_s9 = int_to_ptr.hbm [resolvable:$true] %s1664_s9 }
  0x1e   : > { %s1666_s10 = scalar_lea.hbm %s1665_s9, 64  ;;  %p1672_p5 = scmp.lt.s32.totalorder %s1665_s9, %s2574_s0 }
  0x1f   : > { %p1667_p1 = scmp.ne.s32.totalorder %s1665_s9, %s1666_s10  ;;  %p1673_p7 = scmp.lt.s32.totalorder %s1671_s17, %s1666_s10 }
  0x21   : > { %p1669_p3 = pnand %p1668_p2, %p1667_p1  ;;  %p1674_p8 = por %p1673_p7, %p1672_p5 }
  0x23   : > { %p1670_p4 = pneg %p1669_p3 }
  0x25   : > { %p1675_p9 = pnand %p1674_p8, %p1670_p4 }
  0x27   : > { %1678 = shalt.err (!%p1675_p9)
}
  0x28   : > { %s1796_s20 = smov 256   ;;  %s1797_s22 = smov 16  }
  0x29   : > { %1603 = dma.hbm_to_vmem [thread:$0]  (!%p1919_p12), %s253_s21, 1024, %s255_s23, %s243_s8, %s1796_s20, %s1796_s20, %s1797_s22  }
  0x2a   : > { %p1943_p1 = pnand %p1503_p13, %p284_p0  ;;  %s1500_s10 = sshll.u32 %s1910_s15, 8 }
  0x2b   : > { %s1592_s9 = sshll.u32 %s1794_s27, 8  ;;  %s268_s0 = scalar_lea.vmem [#allocation6], %s1500_s10 }
  0x2c   : > { %s273_s18 = scalar_lea.hbm %s2554_s1, %s1592_s9  ;;  %s276_s26 = sshll.u32 %s268_s0, 4  ;;  %s277_s26 = int_to_ptr.vmem [resolvable:$true] %s276_s26 }
  0x2d   : > { %s274_s19 = sshll.u32 %s273_s18, 4  ;;  %s265_s30 = scalar_lea.sflag [#allocation7], %s1910_s15  ;;  %s275_s19 = int_to_ptr.hbm [resolvable:$true] %s274_s19 }
  0x2e   : > { %s1694_s14 = sshra.s32 %s275_s19, 4  ;;  %s1701_s20 = scalar_lea.hbm %s2554_s1, 1024  ;;  %s1695_s14 = int_to_ptr.hbm [resolvable:$true] %s1694_s14 }
  0x2f   : > { %s1696_s21 = scalar_lea.hbm %s1695_s14, 256  ;;  %p1702_p4 = scmp.lt.s32.totalorder %s1695_s14, %s2554_s1 }
  0x30   : > { %p1697_p3 = scmp.ne.s32.totalorder %s1695_s14, %s1696_s21  ;;  %p1703_p5 = scmp.lt.s32.totalorder %s1701_s20, %s1696_s21 }
  0x32   : > { %p1699_p13 = pnand %p1697_p3, %p1668_p2  ;;  %p1704_p7 = por %p1703_p5, %p1702_p4 }
  0x34   : > { %p1700_p0 = pneg %p1699_p13 }
  0x36   : > { %p1705_p8 = pnand %p1704_p7, %p1700_p0 }
  0x38   : > { %1708 = shalt.err (!%p1705_p8)
}
  0x39   : > { %s1798_s0 = smov 128   ;;  %s1799_s15 = smov 8  }
  0x3a   : > { %1606 = dma.hbm_to_vmem [thread:$0]  (!%p1919_p12), %s275_s19, 4096, %s277_s26, %s265_s30, %s1798_s0, %s1798_s0, %s1799_s15  }
  0x3b   : > { %288 = sbr.rel (%p1943_p1) target bundleno = 1136 (0x470), region = 48  ;;  %s1967_s10 = sand.u32 (!%p1943_p1), 1, %s1786_s25  }
  0x3c   : > { %s1504_s14 = sshll.u32 (!%p1943_p1), %s1967_s10, 6  ;;  %s291_s16 = scalar_lea.sflag (!%p1943_p1), [#allocation4], %s1967_s10 }
  0x3d   : > { %s1973_s17 = scalar_lea.vmem (!%p1943_p1), [#allocation3], %s1504_s14 }
  0x40   : > { %1769 = dma.done.wait (%p1895_p6), %s291_s16, 1024  }
  0x41   : > { %1771 = vsyncadd (%p1895_p6), %s291_s16, 4294966272  ;;  %s1505_s26 = sshll.u32 %s1967_s10, 8  ;;  %s301_s30 = scalar_lea.sflag [#allocation7], %s1967_s10 }
  0x42   : > { %s1981_s29 = scalar_lea.vmem [#allocation6], %s1505_s26 }
  0x43   : > { %1773 = dma.done.wait (%p1895_p6), %s301_s30, 4096  }
  0x44   : > { %1775 = vsyncadd (%p1895_p6), %s301_s30, 4294963200  ;;  %v1536_v0 = vld [vmem:[%s1981_s29 + $0xf8] sm:$0xff]  ;;  %v1534_v1 = vld [vmem:[%s1981_s29 + $0xe8] sm:$0xff]  ;;  %s1800_s11 = smov 112   ;;  %s1801_s18 = smov 96   ;;  %v1805_v18 = vmov 0.0  }
  0x45   : > { %598 = vrot.lane.b32.xlu0 %v1536_v0, %s1800_s11  ;;  %585 = vrot.lane.b32.xlu1 %v1534_v1, %s1801_s18  ;;  %v1533_v2 = vld [vmem:[%s1981_s29 + $0xe0] sm:$0xff]  ;;  %v1535_v3 = vld [vmem:[%s1981_s29 + $0xf0] sm:$0xff]  ;;  %s1802_s12 = smov 80   ;;  %s1803_s19 = smov 64   ;;  %404 = vst [vmem:[#allocation2 + $0x1f8] sm:$0xff] %v1805_v18  ;;  %vm491_vm0 = vcmask 917248  }
  0x46   : > { %583 = vrot.lane.b32.xlu2 %v1533_v2, %s1801_s18  ;;  %v1520_v4 = vld [vmem:[%s1981_s29 + $0x78] sm:$0xff]  ;;  %v1519_v5 = vld [vmem:[%s1981_s29 + $0x70] sm:$0xff]  ;;  %v1518_v7 = vld [vmem:[%s1981_s29 + $0x68] sm:$0xff]  ;;  %s1804_s21 = smov 48   ;;  %734 = vmatpush.msra.mxu2 %v1805_v18  ;;  %341 = vst [vmem:[#allocation2] sm:$0xff] %v1805_v18  ;;  %s1806_s23 = smov 32  }
  0x47   : > { %v1532_v6 = vld [vmem:[%s1981_s29 + $0xd8] sm:$0xff]  ;;  %v1531_v8 = vld [vmem:[%s1981_s29 + $0xd0] sm:$0xff]  ;;  %v1517_v9 = vld [vmem:[%s1981_s29 + $0x60] sm:$0xff]  ;;  %705 = vmatpush.msra.mxu1 %v1805_v18  ;;  %343 = vst [vmem:[#allocation2 + $0x10] sm:$0xff] %v1805_v18  ;;  %s1807_s8 = smov 16   ;;  %vm505_vm1 = vcmask 1048448  }
  0x48   : > { %v1530_v10 = vld [vmem:[%s1981_s29 + $0xc8] sm:$0xff]  ;;  %v1516_v11 = vld [vmem:[%s1981_s29 + $0x58] sm:$0xff]  ;;  %v1529_v12 = vld [vmem:[%s1981_s29 + $0xc0] sm:$0xff]  ;;  %735 = vmatpush.msra.mxu2 %v1805_v18  ;;  %345 = vst [vmem:[#allocation2 + $0x20] sm:$0xff] %v1805_v18  ;;  %vm477_vm2 = vcmask 786048   ;;  %vm449_vm3 = vcmask 523648  }
  0x49   : > { %v1515_v13 = vld [vmem:[%s1981_s29 + $0x50] sm:$0xff]  ;;  %v1528_v14 = vld [vmem:[%s1981_s29 + $0xb8] sm:$0xff]  ;;  %v1514_v15 = vld [vmem:[%s1981_s29 + $0x48] sm:$0xff]  ;;  %706 = vmatpush.msra.mxu1 %v1805_v18  ;;  %347 = vst [vmem:[#allocation2 + $0x30] sm:$0xff] %v1805_v18  ;;  %vm463_vm4 = vcmask 654848   ;;  %vm435_vm5 = vcmask 392448  }
  0x4a   : > { %v1527_v16 = vld [vmem:[%s1981_s29 + $0xb0] sm:$0xff]  ;;  %v1513_v17 = vld [vmem:[%s1981_s29 + $0x40] sm:$0xff]  ;;  %v1526_v19 = vld [vmem:[%s1981_s29 + $0xa8] sm:$0xff]  ;;  %736 = vmatpush.msra.mxu2 %v1805_v18  ;;  %349 = vst [vmem:[#allocation2 + $0x40] sm:$0xff] %v1805_v18  ;;  %vm407_vm6 = vcmask 130048   ;;  %vm421_vm7 = vcmask 261248  }
  0x4b   : > { %v1512_v20 = vld [vmem:[%s1981_s29 + $0x38] sm:$0xff]  ;;  %707 = vmatpush.msra.mxu1 %v1805_v18  ;;  %v1525_v21 = vld [vmem:[%s1981_s29 + $0xa0] sm:$0xff]  ;;  %351 = vst [vmem:[#allocation2 + $0x50] sm:$0xff] %v1805_v18  ;;  %v1511_v22 = vld [vmem:[%s1981_s29 + $0x30] sm:$0xff]  ;;  %vm804_vm8 = vcmask 261120   ;;  %s1808_s30 = smov 1  }
  0x4c   : > { %737 = vmatpush.msra.mxu2 %v1805_v18  ;;  %v1524_v23 = vld [vmem:[%s1981_s29 + $0x98] sm:$0xff]  ;;  %353 = vst [vmem:[#allocation2 + $0x60] sm:$0xff] %v1805_v18  ;;  %v1510_v24 = vld [vmem:[%s1981_s29 + $0x28] sm:$0xff]  ;;  %v1523_v25 = vld [vmem:[%s1981_s29 + $0x90] sm:$0xff] }
  0x4d   : > { %596 = vrot.lane.b32.xlu0 %v1535_v3, %s1800_s11  ;;  %501 = vrot.lane.b32.xlu1 %v1520_v4, %s1800_s11  ;;  %355 = vst [vmem:[#allocation2 + $0x70] sm:$0xff] %v1805_v18  ;;  %v1509_v26 = vld [vmem:[%s1981_s29 + $0x20] sm:$0xff]  ;;  %v1508_v27 = vld [vmem:[%s1981_s29 + $0x18] sm:$0xff] }
  0x4e   : > { %499 = vrot.lane.b32.xlu2 %v1519_v5, %s1800_s11  ;;  %738 = vmatpush.msra.mxu2 %v1805_v18  ;;  %357 = vst [vmem:[#allocation2 + $0x80] sm:$0xff] %v1805_v18  ;;  %v1507_v28 = vld [vmem:[%s1981_s29 + $0x10] sm:$0xff]  ;;  %v1522_v58 = vld [vmem:[%s1981_s29 + $0x88] sm:$0xff]  ;;  %v1521_v60 = vld [vmem:[%s1981_s29 + $0x80] sm:$0xff] }
  0x4f   : > { %708 = vmatpush.msra.mxu1 %v1805_v18  ;;  %359 = vst [vmem:[#allocation2 + $0x90] sm:$0xff] %v1805_v18  ;;  %v406_v2 = vld [vmem:[%s1981_s29 + $0x8] sm:$0xff]  ;;  %v405_v4 = vld [vmem:[%s1981_s29] sm:$0xff]  ;;  %s1810_s29 = smov 127  }
  0x50   : > { %739 = vmatpush.msra.mxu2 %v1805_v18  ;;  %361 = vst [vmem:[#allocation2 + $0xa0] sm:$0xff] %v1805_v18  ;;  %v2120_v5 = vld [vmem:[%s1973_s17] sm:$0xff] }
  0x51   : > { %709 = vmatpush.msra.mxu1 %v1805_v18  ;;  %363 = vst [vmem:[#allocation2 + $0xb0] sm:$0xff] %v1805_v18 }
  0x52   : > { %740 = vmatpush.msra.mxu2 %v1805_v18  ;;  %365 = vst [vmem:[#allocation2 + $0xc0] sm:$0xff] %v1805_v18 }
  0x53   : > { %710 = vmatpush.msra.mxu1 %v1805_v18  ;;  %367 = vst [vmem:[#allocation2 + $0xd0] sm:$0xff] %v1805_v18 }
  0x54   : > { %741 = vmatpush.msra.mxu2 %v1805_v18  ;;  %369 = vst [vmem:[#allocation2 + $0xe0] sm:$0xff] %v1805_v18 }
  0x55   : > { %572 = vrot.lane.b32.xlu0 %v1532_v6, %s1802_s12  ;;  %487 = vrot.lane.b32.xlu1 %v1518_v7, %s1801_s18  ;;  %371 = vst [vmem:[#allocation2 + $0xf0] sm:$0xff] %v1805_v18  ;;  %v2123_v6 = vld [vmem:[%s1973_s17 + $0x8] sm:$0xff] }
  0x56   : > { %570 = vrot.lane.b32.xlu2 %v1531_v8, %s1802_s12  ;;  %742 = vmatpush.msra.mxu2 %v1805_v18  ;;  %374 = vst [vmem:[#allocation2 + $0x108] sm:$0xff] %v1805_v18 }
  0x57   : > { %711 = vmatpush.msra.mxu1 %v1805_v18  ;;  %376 = vst [vmem:[#allocation2 + $0x118] sm:$0xff] %v1805_v18 }
  0x58   : > { %743 = vmatpush.msra.mxu2 %v1805_v18  ;;  %378 = vst [vmem:[#allocation2 + $0x128] sm:$0xff] %v1805_v18 }
  0x59   : > { %712 = vmatpush.msra.mxu1 %v1805_v18  ;;  %380 = vst [vmem:[#allocation2 + $0x138] sm:$0xff] %v1805_v18 }
  0x5a   : > { %744 = vmatpush.msra.mxu2 %v1805_v18  ;;  %382 = vst [vmem:[#allocation2 + $0x148] sm:$0xff] %v1805_v18 }
  0x5b   : > { %713 = vmatpush.msra.mxu1 %v1805_v18  ;;  %384 = vst [vmem:[#allocation2 + $0x158] sm:$0xff] %v1805_v18 }
  0x5c   : > { %745 = vmatpush.msra.mxu2 %v1805_v18  ;;  %386 = vst [vmem:[#allocation2 + $0x168] sm:$0xff] %v1805_v18 }
  0x5d   : > { %485 = vrot.lane.b32.xlu0 %v1517_v9, %s1801_s18  ;;  %559 = vrot.lane.b32.xlu1 %v1530_v10, %s1803_s19  ;;  %388 = vst [vmem:[#allocation2 + $0x178] sm:$0xff] %v1805_v18 }
  0x5e   : > { %473 = vrot.lane.b32.xlu2 %v1516_v11, %s1802_s12  ;;  %746 = vmatpush.msra.mxu2 %v1805_v18  ;;  %390 = vst [vmem:[#allocation2 + $0x188] sm:$0xff] %v1805_v18 }
  0x5f   : > { %714 = vmatpush.msra.mxu1 %v1805_v18  ;;  %392 = vst [vmem:[#allocation2 + $0x198] sm:$0xff] %v1805_v18 }
  0x60   : > { %747 = vmatpush.msra.mxu2 %v1805_v18  ;;  %394 = vst [vmem:[#allocation2 + $0x1a8] sm:$0xff] %v1805_v18 }
  0x61   : > { %715 = vmatpush.msra.mxu1 %v1805_v18  ;;  %396 = vst [vmem:[#allocation2 + $0x1b8] sm:$0xff] %v1805_v18 }
  0x62   : > { %748 = vmatpush.msra.mxu2 %v1805_v18  ;;  %398 = vst [vmem:[#allocation2 + $0x1c8] sm:$0xff] %v1805_v18 }
  0x63   : > { %716 = vmatpush.msra.mxu1 %v1805_v18  ;;  %400 = vst [vmem:[#allocation2 + $0x1d8] sm:$0xff] %v1805_v18 }
  0x64   : > { %749 = vmatpush.msra.mxu2 %v1805_v18  ;;  %402 = vst [vmem:[#allocation2 + $0x1e8] sm:$0xff] %v1805_v18 }
  0x65   : > { %557 = vrot.lane.b32.xlu0 %v1529_v12, %s1803_s19  ;;  %471 = vrot.lane.b32.xlu1 %v1515_v13, %s1802_s12  ;;  %512 = vst.msk [vmem:[#allocation2 + $0x118] sm:$0xff] %vm407_vm6, %v1522_v58  ;;  %v2131_v12 = vld [vmem:[%s1973_s17 + $0x10] sm:$0xff]  ;;  %v2134_v13 = vld [vmem:[%s1973_s17 + $0x18] sm:$0xff] }
  0x66   : > { %546 = vrot.lane.b32.xlu2 %v1528_v14, %s1804_s21  ;;  %717 = vmatpush.msra.mxu1 %v1805_v18  ;;  %511 = vst.msk [vmem:[#allocation2 + $0x108] sm:$0xff] %vm407_vm6, %v1521_v60  ;;  %v792_v60 = vld [vmem:[%s2556_s3] sm:$0xff] }
  0x67   : > { %409 = vst.msk [vmem:[#allocation2 + $0x10] sm:$0xff] %vm407_vm6, %v406_v2  ;;  %750 = vmatmul.f32.vlgmr.msra.gmra.mxu2 %v2120_v5  ;;  %v797_v2 = vld [vmem:[%s2556_s3 + $0x28] sm:$0xff] }
  0x68   : > { %718 = vmatpush.msra.mxu1 %v1805_v18  ;;  %408 = vst.msk [vmem:[#allocation2] sm:$0xff] %vm407_vm6, %v405_v4  ;;  %v799_v4 = vld [vmem:[%s2556_s3 + $0x38] sm:$0xff] }
  0x6a   : > { %719 = vmatpush.msra.mxu1 %v1805_v18 }
  0x6c   : > { %720 = vmatpush.msra.mxu1 %v1805_v18 }
  0x6d   : > { %459 = vrot.lane.b32.xlu0 %v1514_v15, %s1803_s19  ;;  %544 = vrot.lane.b32.xlu1 %v1527_v16, %s1804_s21 }
  0x6e   : > { %457 = vrot.lane.b32.xlu2 %v1513_v17, %s1803_s19  ;;  %721 = vmatmul.f32.vlgmr.msra.gmra.mxu1 %v2123_v6 }
  0x6f   : > { %753 = vmatmul.f32.gmra.mxu2 %v2131_v12 }
  0x75   : > { %533 = vrot.lane.b32.xlu0 %v1526_v19, %s1806_s23  ;;  %445 = vrot.lane.b32.xlu1 %v1512_v20, %s1804_s21  ;;  %v2141_v19 = vld [vmem:[%s1973_s17 + $0x20] sm:$0xff]  ;;  %v2144_v20 = vld [vmem:[%s1973_s17 + $0x28] sm:$0xff] }
  0x76   : > { %531 = vrot.lane.b32.xlu2 %v1525_v21, %s1806_s23  ;;  %724 = vmatmul.f32.gmra.mxu1 %v2134_v13 }
  0x77   : > { %756 = vmatmul.f32.gmra.mxu2 %v2141_v19 }
  0x7d   : > { %443 = vrot.lane.b32.xlu0 %v1511_v22, %s1804_s21  ;;  %520 = vrot.lane.b32.xlu1 %v1524_v23, %s1807_s8 }
  0x7e   : > { %431 = vrot.lane.b32.xlu2 %v1510_v24, %s1806_s23  ;;  %727 = vmatmul.f32.gmra.mxu1 %v2144_v20 }
  0x85   : > { %518 = vrot.lane.b32.xlu0 %v1523_v25, %s1807_s8  ;;  %429 = vrot.lane.b32.xlu1 %v1509_v26, %s1806_s23  ;;  %v2151_v26 = vld [vmem:[%s1973_s17 + $0x30] sm:$0xff]  ;;  %s1383_s23 = scalar_lea.sflag [#allocation5], %s1967_s10 }
  0x86   : > { %417 = vrot.lane.b32.xlu2 %v1508_v27, %s1807_s8  ;;  %v2154_v27 = vld [vmem:[%s1973_s17 + $0x38] sm:$0xff]  ;;  %759 = vmatmul.f32.gmra.mxu2 %v2151_v26 }
  0x87   : > { %730 = vmatmul.f32.gmra.mxu1 %v2154_v27 }
  0x8d   : > { %415 = vrot.lane.b32.xlu0 %v1507_v28, %s1807_s8 }
  0xa0   : > { %v584_v29 = vpop.permute.xlu2 %583 }
  0xa1   : > { %589 = vst.msk [vmem:[#allocation2 + $0x1c8] sm:$0xff] %vm491_vm0, %v584_v29 }
  0xa8   : > { %v500_v30 = vpop.permute.xlu2 %499  ;;  %v669_v46 = vld [vmem:[#allocation2 + $0x1c8] sm:$0xff] }
  0xa9   : > { %506 = vst.msk [vmem:[#allocation2 + $0xe0] sm:$0xff] %vm505_vm1, %v500_v30  ;;  %v647_v30 = vld [vmem:[#allocation2 + $0x118] sm:$0xff] }
  0xb0   : > { %v571_v31 = vpop.permute.xlu2 %570  ;;  %v640_v43 = vld [vmem:[#allocation2 + $0xe0] sm:$0xff] }
  0xb1   : > { %576 = vst.msk [vmem:[#allocation2 + $0x1a8] sm:$0xff] %vm477_vm2, %v571_v31 }
  0xb7   : > { %v599_v32 = vpop.permute.xlu0 %598  ;;  %v586_v33 = vpop.permute.xlu1 %585 }
  0xb8   : > { %603 = vst.msk [vmem:[#allocation2 + $0x1f8] sm:$0xff] %vm505_vm1, %v599_v32  ;;  %v474_v34 = vpop.permute.xlu2 %473  ;;  %v665_v50 = vld [vmem:[#allocation2 + $0x1a8] sm:$0xff] }
  0xb9   : > { %590 = vst.msk [vmem:[#allocation2 + $0x1d8] sm:$0xff] %vm491_vm0, %v586_v33  ;;  %v645_v33 = vld [vmem:[#allocation2 + $0x108] sm:$0xff] }
  0xba   : > { %479 = vst.msk [vmem:[#allocation2 + $0xb0] sm:$0xff] %vm477_vm2, %v474_v34 }
  0xbf   : > { %v597_v35 = vpop.permute.xlu0 %596  ;;  %v675_v36 = vld [vmem:[#allocation2 + $0x1f8] sm:$0xff]  ;;  %v502_v37 = vpop.permute.xlu1 %501 }
  0xc0   : > { %602 = vst.msk [vmem:[#allocation2 + $0x1e8] sm:$0xff] %vm505_vm1, %v597_v35  ;;  %763 = vmatpush.msra.mxu3 %v675_v36  ;;  %v547_v38 = vpop.permute.xlu2 %546  ;;  %v671_v44 = vld [vmem:[#allocation2 + $0x1d8] sm:$0xff]  ;;  %v614_v35 = vld [vmem:[#allocation2 + $0x10] sm:$0xff]  ;;  %v612_v36 = vld [vmem:[#allocation2] sm:$0xff] }
  0xc1   : > { %507 = vst.msk [vmem:[#allocation2 + $0xf0] sm:$0xff] %vm505_vm1, %v502_v37  ;;  %v634_v56 = vld [vmem:[#allocation2 + $0xb0] sm:$0xff] }
  0xc2   : > { %551 = vst.msk [vmem:[#allocation2 + $0x178] sm:$0xff] %vm449_vm3, %v547_v38 }
  0xc7   : > { %v573_v39 = vpop.permute.xlu0 %572  ;;  %v673_v40 = vld [vmem:[#allocation2 + $0x1e8] sm:$0xff]  ;;  %v488_v41 = vpop.permute.xlu1 %487 }
  0xc8   : > { %577 = vst.msk [vmem:[#allocation2 + $0x1b8] sm:$0xff] %vm477_vm2, %v573_v39  ;;  %764 = vmatpush.msra.mxu3 %v673_v40  ;;  %v642_v42 = vld [vmem:[#allocation2 + $0xf0] sm:$0xff]  ;;  %v458_v45 = vpop.permute.xlu2 %457 }
  0xc9   : > { %493 = vst.msk [vmem:[#allocation2 + $0xd0] sm:$0xff] %vm491_vm0, %v488_v41  ;;  %676 = vmatpush.msra.mxu0 %v642_v42  ;;  %v659_v0 = vld [vmem:[#allocation2 + $0x178] sm:$0xff] }
  0xca   : > { %765 = vmatpush.msra.mxu3 %v671_v44  ;;  %464 = vst.msk [vmem:[#allocation2 + $0x80] sm:$0xff] %vm463_vm4, %v458_v45 }
  0xcb   : > { %677 = vmatpush.msra.mxu0 %v640_v43 }
  0xcc   : > { %766 = vmatpush.msra.mxu3 %v669_v46 }
  0xcf   : > { %v486_v47 = vpop.permute.xlu0 %485  ;;  %v667_v48 = vld [vmem:[#allocation2 + $0x1b8] sm:$0xff]  ;;  %v560_v49 = vpop.permute.xlu1 %559 }
  0xd0   : > { %492 = vst.msk [vmem:[#allocation2 + $0xc0] sm:$0xff] %vm491_vm0, %v486_v47  ;;  %767 = vmatpush.msra.mxu3 %v667_v48  ;;  %v638_v51 = vld [vmem:[#allocation2 + $0xd0] sm:$0xff]  ;;  %v532_v52 = vpop.permute.xlu2 %531 }
  0xd1   : > { %564 = vst.msk [vmem:[#allocation2 + $0x198] sm:$0xff] %vm463_vm4, %v560_v49  ;;  %678 = vmatpush.msra.mxu0 %v638_v51  ;;  %v628_v10 = vld [vmem:[#allocation2 + $0x80] sm:$0xff] }
  0xd2   : > { %768 = vmatpush.msra.mxu3 %v665_v50  ;;  %537 = vst.msk [vmem:[#allocation2 + $0x148] sm:$0xff] %vm435_vm5, %v532_v52 }
  0xd7   : > { %v558_v53 = vpop.permute.xlu0 %557  ;;  %v636_v54 = vld [vmem:[#allocation2 + $0xc0] sm:$0xff]  ;;  %v472_v55 = vpop.permute.xlu1 %471 }
  0xd8   : > { %563 = vst.msk [vmem:[#allocation2 + $0x188] sm:$0xff] %vm463_vm4, %v558_v53  ;;  %679 = vmatpush.msra.mxu0 %v636_v54  ;;  %v663_v57 = vld [vmem:[#allocation2 + $0x198] sm:$0xff]  ;;  %v432_v59 = vpop.permute.xlu2 %431 }
  0xd9   : > { %478 = vst.msk [vmem:[#allocation2 + $0xa0] sm:$0xff] %vm477_vm2, %v472_v55  ;;  %769 = vmatpush.msra.mxu3 %v663_v57  ;;  %v653_v17 = vld [vmem:[#allocation2 + $0x148] sm:$0xff] }
  0xda   : > { %680 = vmatpush.msra.mxu0 %v634_v56  ;;  %437 = vst.msk [vmem:[#allocation2 + $0x50] sm:$0xff] %vm435_vm5, %v432_v59 }
  0xdf   : > { %v460_v61 = vpop.permute.xlu0 %459  ;;  %v661_v62 = vld [vmem:[#allocation2 + $0x188] sm:$0xff]  ;;  %v545_v63 = vpop.permute.xlu1 %544 }
  0xe0   : > { %465 = vst.msk [vmem:[#allocation2 + $0x90] sm:$0xff] %vm463_vm4, %v460_v61  ;;  %770 = vmatpush.msra.mxu3 %v661_v62  ;;  %v632_v1 = vld [vmem:[#allocation2 + $0xa0] sm:$0xff]  ;;  %v418_v3 = vpop.permute.xlu2 %417  ;;  %v793_v62 = vld [vmem:[%s2556_s3 + $0x8] sm:$0xff] }
  0xe1   : > { %550 = vst.msk [vmem:[#allocation2 + $0x168] sm:$0xff] %vm449_vm3, %v545_v63  ;;  %681 = vmatpush.msra.mxu0 %v632_v1  ;;  %v622_v24 = vld [vmem:[#allocation2 + $0x50] sm:$0xff]  ;;  %v796_v1 = vld [vmem:[%s2556_s3 + $0x20] sm:$0xff] }
  0xe2   : > { %771 = vmatpush.msra.mxu3 %v659_v0  ;;  %423 = vst.msk [vmem:[#allocation2 + $0x30] sm:$0xff] %vm421_vm7, %v418_v3  ;;  %v794_v63 = vld [vmem:[%s2556_s3 + $0x10] sm:$0xff]  ;;  %v795_v0 = vld [vmem:[%s2556_s3 + $0x18] sm:$0xff] }
  0xe3   : > { %v798_v3 = vld [vmem:[%s2556_s3 + $0x30] sm:$0xff] }
  0xe7   : > { %v534_v7 = vpop.permute.xlu0 %533  ;;  %v630_v8 = vld [vmem:[#allocation2 + $0x90] sm:$0xff]  ;;  %v446_v9 = vpop.permute.xlu1 %445 }
  0xe8   : > { %538 = vst.msk [vmem:[#allocation2 + $0x158] sm:$0xff] %vm435_vm5, %v534_v7  ;;  %682 = vmatpush.msra.mxu0 %v630_v8  ;;  %v657_v11 = vld [vmem:[#allocation2 + $0x168] sm:$0xff]  ;;  %v800_v7 = vld [vmem:[%s2556_s3 + $0x40] sm:$0xff] }
  0xe9   : > { %451 = vst.msk [vmem:[#allocation2 + $0x70] sm:$0xff] %vm449_vm3, %v446_v9  ;;  %772 = vmatpush.msra.mxu3 %v657_v11  ;;  %v618_v32 = vld [vmem:[#allocation2 + $0x30] sm:$0xff]  ;;  %v801_v8 = vld [vmem:[%s2556_s3 + $0x48] sm:$0xff] }
  0xea   : > { %683 = vmatpush.msra.mxu0 %v628_v10  ;;  %v751_v37 = vpop.f32.mrf.mxu2  ;;  %v802_v9 = vld [vmem:[%s2556_s3 + $0x50] sm:$0xff]  ;;  %v803_v10 = vld [vmem:[%s2556_s3 + $0x58] sm:$0xff] }
  0xeb   : > { %v722_v38 = vpop.f32.mrf.mxu1 }
  0xef   : > { %v444_v14 = vpop.permute.xlu0 %443  ;;  %v655_v15 = vld [vmem:[#allocation2 + $0x158] sm:$0xff]  ;;  %v521_v16 = vpop.permute.xlu1 %520 }
  0xf0   : > { %450 = vst.msk [vmem:[#allocation2 + $0x60] sm:$0xff] %vm449_vm3, %v444_v14  ;;  %773 = vmatpush.msra.mxu3 %v655_v15  ;;  %v626_v18 = vld [vmem:[#allocation2 + $0x70] sm:$0xff] }
  0xf1   : > { %525 = vst.msk [vmem:[#allocation2 + $0x138] sm:$0xff] %vm421_vm7, %v521_v16  ;;  %684 = vmatpush.msra.mxu0 %v626_v18 }
  0xf2   : > { %774 = vmatpush.msra.mxu3 %v653_v17  ;;  %v754_v41 = vpop.f32.mrf.mxu2 }
  0xf3   : > { %v725_v42 = vpop.f32.mrf.mxu1 }
  0xf7   : > { %v519_v21 = vpop.permute.xlu0 %518  ;;  %v624_v22 = vld [vmem:[#allocation2 + $0x60] sm:$0xff]  ;;  %v430_v23 = vpop.permute.xlu1 %429 }
  0xf8   : > { %524 = vst.msk [vmem:[#allocation2 + $0x128] sm:$0xff] %vm421_vm7, %v519_v21  ;;  %685 = vmatpush.msra.mxu0 %v624_v22  ;;  %v651_v25 = vld [vmem:[#allocation2 + $0x138] sm:$0xff] }
  0xf9   : > { %436 = vst.msk [vmem:[#allocation2 + $0x40] sm:$0xff] %vm435_vm5, %v430_v23  ;;  %775 = vmatpush.msra.mxu3 %v651_v25 }
  0xfa   : > { %686 = vmatpush.msra.mxu0 %v622_v24  ;;  %v757_v45 = vpop.f32.mrf.mxu2 }
  0xfb   : > { %v728_v46 = vpop.f32.mrf.mxu1 }
  0xff   : > { %v416_v28 = vpop.permute.xlu0 %415  ;;  %v649_v29 = vld [vmem:[#allocation2 + $0x128] sm:$0xff] }
 0x100   : > { %422 = vst.msk [vmem:[#allocation2 + $0x20] sm:$0xff] %vm421_vm7, %v416_v28  ;;  %776 = vmatpush.msra.mxu3 %v649_v29  ;;  %v620_v31 = vld [vmem:[#allocation2 + $0x40] sm:$0xff] }
 0x101   : > { %687 = vmatpush.msra.mxu0 %v620_v31 }
 0x102   : > { %777 = vmatpush.msra.mxu3 %v647_v30 }
 0x103   : > { %688 = vmatpush.msra.mxu0 %v618_v32 }
 0x104   : > { %778 = vmatpush.msra.mxu3 %v645_v33  ;;  %v731_v51 = vpop.f32.mrf.mxu1  ;;  %v1809_v33 = vmov 0  }
 0x105   : > { %779 = vmatmul.f32.vlgmr.msra.gmra.mxu3 %v2123_v6  ;;  %1662 = vset.pattern.permute.xlu1 %v1809_v33 }
 0x106   : > { %1661 = vset.pattern.permute.xlu0 %v1809_v33  ;;  %1663 = vset.pattern.permute.xlu2 %v1809_v33 }
 0x107   : > { %v616_v34 = vld [vmem:[#allocation2 + $0x20] sm:$0xff] }
 0x108   : > { %689 = vmatpush.msra.mxu0 %v616_v34 }
 0x109   : > { %v760_v49 = vpop.f32.mrf.mxu2 }
 0x10a   : > { %690 = vmatpush.msra.mxu0 %v614_v35 }
 0x10c   : > { %691 = vmatpush.msra.mxu0 %v612_v36 }
 0x10d   : > { %692 = vmatmul.f32.vlgmr.msra.gmra.mxu0 %v2120_v5  ;;  %782 = vmatmul.f32.gmra.mxu3 %v2134_v13 }
 0x115   : > { %695 = vmatmul.f32.gmra.mxu0 %v2131_v12  ;;  %785 = vmatmul.f32.gmra.mxu3 %v2144_v20 }
 0x11d   : > { %698 = vmatmul.f32.gmra.mxu0 %v2141_v19  ;;  %788 = vmatmul.f32.gmra.mxu3 %v2154_v27 }
 0x125   : > { %701 = vmatmul.f32.gmra.mxu0 %v2151_v26 }
 0x188   : > { %v780_v39 = vpop.f32.mrf.mxu3 }
 0x189   : > { %v781_v58 = vadd.f32 %v780_v39, %v751_v37 }
 0x18a   : > { %v693_v40 = vpop.f32.mrf.mxu0 }
 0x18b   : > { %v723_v61 = vadd.f32 %v722_v38, %v693_v40 }
 0x190   : > { %v783_v43 = vpop.f32.mrf.mxu3 }
 0x191   : > { %v784_v56 = vadd.f32 %v783_v43, %v754_v41  ;;  %v1047_v43 = vld [vmem:[%s2557_s4 + $0x18] sm:$0xff] }
 0x192   : > { %v696_v44 = vpop.f32.mrf.mxu0 }
 0x193   : > { %v726_v59 = vadd.f32 %v725_v42, %v696_v44  ;;  %v1046_v42 = vld [vmem:[%s2557_s4 + $0x10] sm:$0xff]  ;;  %v1044_v44 = vld [vmem:[%s2557_s4] sm:$0xff] }
 0x198   : > { %v786_v47 = vpop.f32.mrf.mxu3 }
 0x199   : > { %v787_v54 = vadd.f32 %v786_v47, %v757_v45  ;;  %v1045_v45 = vld [vmem:[%s2557_s4 + $0x8] sm:$0xff] }
 0x19a   : > { %v699_v48 = vpop.f32.mrf.mxu0 }
 0x19b   : > { %v729_v57 = vadd.f32 %v728_v46, %v699_v48  ;;  %v1318_v46 = vld [vmem:[%s2559_s6] sm:$0xff] }
 0x1a0   : > { %v789_v50 = vpop.f32.mrf.mxu3 }
 0x1a1   : > { %v790_v52 = vadd.f32 %v789_v50, %v760_v49 }
 0x1a2   : > { %v702_v53 = vpop.f32.mrf.mxu0 }
 0x1a3   : > { %v732_v55 = vadd.f32 %v731_v51, %v702_v53  ;;  %906 = vmatpush.msrb.mxu1 %v790_v52 }
 0x1a5   : > { %853 = vmatpush.msrb.mxu0 %v732_v55  ;;  %907 = vmatpush.msrb.mxu1 %v787_v54 }
 0x1a7   : > { %854 = vmatpush.msrb.mxu0 %v729_v57  ;;  %908 = vmatpush.msrb.mxu1 %v784_v56  ;;  %v963_v57 = vlaneseq }
 0x1a9   : > { %855 = vmatpush.msrb.mxu0 %v726_v59  ;;  %909 = vmatpush.msrb.mxu1 %v781_v58  ;;  %v2274_v59 = vand.u32 127, %v963_v57 }
 0x1aa   : > { %1549 = vmatmul.msk.f32.vlgmr.msrb.gmra.mxu1 %vm804_vm8, %v792_v60 }
 0x1ab   : > { %856 = vmatpush.msrb.mxu0 %v723_v61  ;;  %vm965_vm9 = vcmp.lt.s32.totalorder %v2274_v59, 1  ;;  %vm1012_vm10 = vcmp.lt.s32.totalorder %v2274_v59, 127 }
 0x1ac   : > { %1537 = vmatmul.msk.f32.vlgmr.msrb.gmra.mxu0 %vm804_vm8, %v792_v60 }
 0x1b2   : > { %1550 = vmatmul.msk.f32.gmra.mxu1 %vm804_vm8, %v793_v62 }
 0x1b4   : > { %1538 = vmatmul.msk.f32.gmra.mxu0 %vm804_vm8, %v793_v62  ;;  %v974_v62 = vld [vmem:[%s2555_s2] sm:$0x3] }
 0x1ba   : > { %1551 = vmatmul.msk.f32.gmra.mxu1 %vm804_vm8, %v794_v63 }
 0x1bc   : > { %1539 = vmatmul.msk.f32.gmra.mxu0 %vm804_vm8, %v794_v63 }
 0x1c2   : > { %1552 = vmatmul.msk.f32.gmra.mxu1 %vm804_vm8, %v795_v0 }
 0x1c4   : > { %1540 = vmatmul.msk.f32.gmra.mxu0 %vm804_vm8, %v795_v0 }
 0x1ca   : > { %1553 = vmatmul.msk.f32.gmra.mxu1 %vm804_vm8, %v796_v1 }
 0x1cc   : > { %1541 = vmatmul.msk.f32.gmra.mxu0 %vm804_vm8, %v796_v1 }
 0x1d2   : > { %1554 = vmatmul.msk.f32.gmra.mxu1 %vm804_vm8, %v797_v2 }
 0x1d4   : > { %1542 = vmatmul.msk.f32.gmra.mxu0 %vm804_vm8, %v797_v2 }
 0x1da   : > { %1555 = vmatmul.msk.f32.gmra.mxu1 %vm804_vm8, %v798_v3 }
 0x1dc   : > { %1543 = vmatmul.msk.f32.gmra.mxu0 %vm804_vm8, %v798_v3  ;;  %v2288_v3 = vperm.slane %v974_v62, 0 }
 0x1e2   : > { %1556 = vmatmul.msk.f32.gmra.mxu1 %vm804_vm8, %v799_v4 }
 0x1e4   : > { %1544 = vmatmul.msk.f32.gmra.mxu0 %vm804_vm8, %v799_v4  ;;  %v2290_v4 = vperm.slane %v974_v62, 1 }
 0x1ea   : > { %1557 = vmatmul.msk.f32.gmra.mxu1 %vm804_vm8, %v800_v7 }
 0x1ec   : > { %1545 = vmatmul.msk.f32.gmra.mxu0 %vm804_vm8, %v800_v7  ;;  %v1561_v7 = vld [vmem:[%s2555_s2 + $0x4] sm:$0x3] }
 0x1f2   : > { %1558 = vmatmul.msk.f32.gmra.mxu1 %vm804_vm8, %v801_v8 }
 0x1f4   : > { %1546 = vmatmul.msk.f32.gmra.mxu0 %vm804_vm8, %v801_v8 }
 0x1fa   : > { %1559 = vmatmul.msk.f32.gmra.mxu1 %vm804_vm8, %v802_v9 }
 0x1fc   : > { %1547 = vmatmul.msk.f32.gmra.mxu0 %vm804_vm8, %v802_v9 }
 0x202   : > { %1560 = vmatmul.msk.f32.gmra.mxu1 %vm804_vm8, %v803_v10 }
 0x204   : > { %1548 = vmatmul.msk.f32.gmra.mxu0 %vm804_vm8, %v803_v10 }
 0x227   : > { %v911_v11 = vpop.f32.mrf.mxu1 }
 0x228   : > { %955 = vrot.lane.b32.xlu0 %v911_v11, %s1808_s30 }
 0x229   : > { %v858_v14 = vpop.f32.mrf.mxu0 }
 0x22a   : > { %947 = vrot.lane.b32.xlu2 %v858_v14, %s1808_s30 }
 0x22f   : > { %v914_v15 = vpop.f32.mrf.mxu1 }
 0x231   : > { %v861_v16 = vpop.f32.mrf.mxu0 }
 0x232   : > { %949 = vrot.lane.b32.xlu1 %v861_v16, %s1808_s30  ;;  %957 = vrot.lane.b32.xlu2 %v914_v15, %s1808_s30 }
 0x237   : > { %v917_v17 = vpop.f32.mrf.mxu1 }
 0x239   : > { %v864_v18 = vpop.f32.mrf.mxu0 }
 0x23a   : > { %959 = vrot.lane.b32.xlu1 %v917_v17, %s1808_s30  ;;  %951 = vrot.lane.b32.xlu0 %v864_v18, %s1808_s30  ;;  %v2304_v17 = vperm.slane %v1561_v7, 0  ;;  %v2306_v18 = vperm.slane %v1561_v7, 1 }
 0x23f   : > { %v920_v21 = vpop.f32.mrf.mxu1 }
 0x240   : > { %961 = vrot.lane.b32.xlu2 %v920_v21, %s1808_s30 }
 0x241   : > { %v867_v22 = vpop.f32.mrf.mxu0 }
 0x242   : > { %953 = vrot.lane.b32.xlu1 %v867_v22, %s1808_s30 }
 0x247   : > { %v2235_v23 = vpop.f32.mrf.mxu1 }
 0x249   : > { %v2237_v24 = vpop.f32.mrf.mxu0 }
 0x24f   : > { %v2239_v25 = vpop.f32.mrf.mxu1 }
 0x251   : > { %v2241_v28 = vpop.f32.mrf.mxu0 }
 0x257   : > { %v2243_v29 = vpop.f32.mrf.mxu1 }
 0x259   : > { %v2245_v30 = vpop.f32.mrf.mxu0 }
 0x25f   : > { %v2247_v31 = vpop.f32.mrf.mxu1 }
 0x261   : > { %v2249_v32 = vpop.f32.mrf.mxu0 }
 0x267   : > { %v935_v34 = vpop.f32.mrf.mxu1 }
 0x269   : > { %v882_v35 = vpop.f32.mrf.mxu0 }
 0x26f   : > { %v938_v36 = vpop.f32.mrf.mxu1 }
 0x270   : > { %1006 = vrot.lane.b32.xlu2 %v938_v36, %s1810_s29 }
 0x271   : > { %v885_v37 = vpop.f32.mrf.mxu0 }
 0x272   : > { %998 = vrot.lane.b32.xlu1 %v885_v37, %s1810_s29 }
 0x277   : > { %v941_v38 = vpop.f32.mrf.mxu1 }
 0x279   : > { %v888_v39 = vpop.f32.mrf.mxu0 }
 0x27a   : > { %1008 = vrot.lane.b32.xlu1 %v941_v38, %s1810_s29  ;;  %1000 = vrot.lane.b32.xlu0 %v888_v39, %s1810_s29 }
 0x27f   : > { %v944_v40 = vpop.f32.mrf.mxu1 }
 0x281   : > { %v891_v41 = vpop.f32.mrf.mxu0 }
 0x282   : > { %996 = vrot.lane.b32.xlu1 %v882_v35, %s1810_s29  ;;  %1010 = vrot.lane.b32.xlu0 %v944_v40, %s1810_s29 }
 0x283   : > { %1002 = vrot.lane.b32.xlu2 %v891_v41, %s1810_s29 }
 0x284   : > { %v948_v47 = vpop.permute.xlu2 %947 }
 0x28a   : > { %1060 = vperm.xlu1 %1662, %v1046_v42   ;;  %1065 = vperm.xlu0 %1661, %v1047_v43  }
 0x28b   : > { %1004 = vrot.lane.b32.xlu2 %v935_v34, %s1810_s29 }
 0x28c   : > { %v958_v49 = vpop.permute.xlu2 %957 }
 0x292   : > { %1050 = vperm.xlu0 %1661, %v1044_v44  }
 0x293   : > { %1055 = vperm.xlu2 %1663, %v1045_v45  }
 0x29a   : > { %v962_v51 = vpop.permute.xlu2 %961  ;;  %v956_v52 = vpop.permute.xlu0 %955 }
 0x29b   : > { %1324 = vperm.xlu2 %1663, %v1318_v46   ;;  %v966_v39 = vsel %vm965_vm9, %v948_v47, %v956_v52  ;;  %v970_v40 = vsel %vm965_vm9, %v956_v52, %v948_v47 }
 0x2a4   : > { %v950_v48 = vpop.permute.xlu1 %949 }
 0x2a5   : > { %v967_v9 = vsel %vm965_vm9, %v950_v48, %v958_v49  ;;  %v971_v10 = vsel %vm965_vm9, %v958_v49, %v950_v48 }
 0x2a6   : > { %v982_v41 = vmul.f32 %v2288_v3, %v971_v10  ;;  %v983_v42 = vmul.f32 %v2290_v4, %v967_v9 }
 0x2ac   : > { %v960_v50 = vpop.permute.xlu1 %959  ;;  %v952_v55 = vpop.permute.xlu0 %951 }
 0x2ad   : > { %v968_v63 = vsel %vm965_vm9, %v952_v55, %v960_v50  ;;  %v972_v0 = vsel %vm965_vm9, %v960_v50, %v952_v55  ;;  %v990_v55 = vadd.f32 %v982_v41, %v2241_v28 }
 0x2ae   : > { %v984_v11 = vmul.f32 %v2288_v3, %v972_v0  ;;  %v985_v14 = vmul.f32 %v2290_v4, %v968_v63 }
 0x2b0   : > { %v992_v50 = vadd.f32 %v984_v11, %v2245_v30  ;;  %v993_v47 = vadd.f32 %v985_v14, %v2243_v29 }
 0x2b4   : > { %v954_v53 = vpop.permute.xlu1 %953 }
 0x2b5   : > { %v969_v1 = vsel %vm965_vm9, %v954_v53, %v962_v51  ;;  %v973_v2 = vsel %vm965_vm9, %v962_v51, %v954_v53  ;;  %v980_v53 = vmul.f32 %v2288_v3, %v970_v40 }
 0x2b6   : > { %v986_v15 = vmul.f32 %v2288_v3, %v973_v2  ;;  %v987_v16 = vmul.f32 %v2290_v4, %v969_v1 }
 0x2b8   : > { %v994_v51 = vadd.f32 %v986_v15, %v2249_v32  ;;  %v995_v52 = vadd.f32 %v987_v16, %v2247_v31  ;;  %v988_v16 = vadd.f32 %v980_v53, %v2237_v24  ;;  %v1085_v24 = vld [vmem:[%s2558_s5 + $0x8] sm:$0xff] }
 0x2ca   : > { %v1007_v54 = vpop.permute.xlu2 %1006 }
 0x2dd   : > { %v1003_v58 = vpop.permute.xlu2 %1002 }
 0x2e4   : > { %v999_v56 = vpop.permute.xlu1 %998 }
 0x2e5   : > { %v1005_v8 = vpop.permute.xlu2 %1004  ;;  %v1014_v35 = vsel %vm1012_vm10, %v999_v56, %v1007_v54  ;;  %v1018_v36 = vsel %vm1012_vm10, %v1007_v54, %v999_v56  ;;  %v981_v54 = vmul.f32 %v2290_v4, %v966_v39  ;;  %v991_v56 = vadd.f32 %v983_v42, %v2239_v25  ;;  %v1086_v42 = vld [vmem:[%s2558_s5 + $0x10] sm:$0xff] }
 0x2e6   : > { %v1030_v48 = vmul.f32 %v2304_v17, %v1014_v35  ;;  %v1031_v49 = vmul.f32 %v2306_v18, %v1018_v36 }
 0x2e8   : > { %v1038_v30 = vadd.f32 %v1030_v48, %v990_v55  ;;  %v1039_v63 = vadd.f32 %v1031_v49, %v991_v56  ;;  %v1091_v48 = vld [vmem:[%s2558_s5 + $0x38] sm:$0xff]  ;;  %v1092_v49 = vld [vmem:[%s2558_s5 + $0x40] sm:$0xff] }
 0x2ec   : > { %v1009_v60 = vpop.permute.xlu1 %1008  ;;  %v1001_v61 = vpop.permute.xlu0 %1000 }
 0x2ed   : > { %v1015_v21 = vsel %vm1012_vm10, %v1001_v61, %v1009_v60  ;;  %v1019_v22 = vsel %vm1012_vm10, %v1009_v60, %v1001_v61  ;;  %v1056_v57 = vpop.permute.xlu2 %1055 }
 0x2ee   : > { %v1032_v43 = vmul.f32 %v2304_v17, %v1015_v21  ;;  %v1033_v44 = vmul.f32 %v2306_v18, %v1019_v22  ;;  %v1070_v25 = vadd.f32 %v1056_v57, %v1038_v30  ;;  %v1071_v9 = vadd.f32 %v1056_v57, %v1039_v63 }
 0x2ef   : > { %v989_v21 = vadd.f32 %v981_v54, %v2235_v23  ;;  %v1084_v23 = vld [vmem:[%s2558_s5] sm:$0xff] }
 0x2f0   : > { %v1041_v60 = vadd.f32 %v1033_v44, %v993_v47  ;;  %v1078_v35 = vmax.f32 %v1070_v25, 0.0  ;;  %v1079_v36 = vmax.f32 %v1071_v9, 0.0  ;;  %v1088_v44 = vld [vmem:[%s2558_s5 + $0x20] sm:$0xff]  ;;  %v1094_v47 = vld [vmem:[%s2558_s5 + $0x50] sm:$0xff] }
 0x2f4   : > { %v997_v33 = vpop.permute.xlu1 %996  ;;  %v1011_v34 = vpop.permute.xlu0 %1010 }
 0x2f5   : > { %v1016_v37 = vsel %vm1012_vm10, %v1003_v58, %v1011_v34  ;;  %v1020_v38 = vsel %vm1012_vm10, %v1011_v34, %v1003_v58  ;;  %v1040_v58 = vadd.f32 %v1032_v43, %v992_v50  ;;  %v1013_v29 = vsel %vm1012_vm10, %v997_v33, %v1005_v8  ;;  %v1087_v43 = vld [vmem:[%s2558_s5 + $0x18] sm:$0xff]  ;;  %v1093_v50 = vld [vmem:[%s2558_s5 + $0x48] sm:$0xff] }
 0x2f6   : > { %v1034_v45 = vmul.f32 %v2304_v17, %v1016_v37  ;;  %v1035_v46 = vmul.f32 %v2306_v18, %v1020_v38  ;;  %v1017_v31 = vsel %vm1012_vm10, %v1005_v8, %v997_v33  ;;  %v1028_v10 = vmul.f32 %v2304_v17, %v1013_v29 }
 0x2f7   : > { %v1029_v11 = vmul.f32 %v2306_v18, %v1017_v31 }
 0x2f8   : > { %v1042_v61 = vadd.f32 %v1034_v45, %v994_v51  ;;  %v1043_v62 = vadd.f32 %v1035_v46, %v995_v52  ;;  %v1036_v33 = vadd.f32 %v1028_v10, %v988_v16  ;;  %v1089_v45 = vld [vmem:[%s2558_s5 + $0x28] sm:$0xff]  ;;  %v1090_v46 = vld [vmem:[%s2558_s5 + $0x30] sm:$0xff]  ;;  %v1095_v51 = vld [vmem:[%s2558_s5 + $0x58] sm:$0xff] }
 0x2f9   : > { %v1037_v34 = vadd.f32 %v1029_v11, %v989_v21  ;;  %v1321_v10 = vld [vmem:[%s2559_s6 + $0x18] sm:$0xff]  ;;  %v1319_v16 = vld [vmem:[%s2559_s6 + $0x8] sm:$0xff] }
 0x2fc   : > { %v1061_v32 = vpop.permute.xlu1 %1060  ;;  %v1066_v0 = vpop.permute.xlu0 %1065 }
 0x2fd   : > { %v1072_v1 = vadd.f32 %v1061_v32, %v1040_v58  ;;  %v1073_v2 = vadd.f32 %v1061_v32, %v1041_v60  ;;  %v1074_v28 = vadd.f32 %v1066_v0, %v1042_v61  ;;  %v1075_v7 = vadd.f32 %v1066_v0, %v1043_v62 }
 0x2ff   : > { %v1082_v14 = vmax.f32 %v1074_v28, 0.0  ;;  %v1083_v15 = vmax.f32 %v1075_v7, 0.0  ;;  %v1080_v8 = vmax.f32 %v1072_v1, 0.0  ;;  %v1081_v22 = vmax.f32 %v1073_v2, 0.0 }
 0x301   : > { %1144 = vmatpush.msrb.mxu2 %v1082_v14  ;;  %1197 = vmatpush.msrb.mxu3 %v1083_v15  ;;  %v1320_v15 = vld [vmem:[%s2559_s6 + $0x10] sm:$0xff] }
 0x303   : > { %1145 = vmatpush.msrb.mxu2 %v1080_v8  ;;  %1198 = vmatpush.msrb.mxu3 %v1081_v22  ;;  %v1325_v8 = vpop.permute.xlu2 %1324 }
 0x304   : > { %v1051_v37 = vpop.permute.xlu0 %1050 }
 0x305   : > { %v1068_v38 = vadd.f32 %v1051_v37, %v1036_v33  ;;  %v1069_v39 = vadd.f32 %v1051_v37, %v1037_v34  ;;  %1146 = vmatpush.msrb.mxu2 %v1078_v35  ;;  %1199 = vmatpush.msrb.mxu3 %v1079_v36 }
 0x307   : > { %v1076_v40 = vmax.f32 %v1068_v38, 0.0  ;;  %v1077_v41 = vmax.f32 %v1069_v39, 0.0 }
 0x309   : > { %1147 = vmatpush.msrb.mxu2 %v1076_v40  ;;  %1200 = vmatpush.msrb.mxu3 %v1077_v41 }
 0x30a   : > { %1562 = vmatmul.msk.f32.vlgmr.msrb.gmra.mxu2 %vm804_vm8, %v1084_v23  ;;  %1574 = vmatmul.msk.f32.vlgmr.msrb.gmra.mxu3 %vm804_vm8, %v1084_v23 }
 0x312   : > { %1563 = vmatmul.msk.f32.gmra.mxu2 %vm804_vm8, %v1085_v24  ;;  %1575 = vmatmul.msk.f32.gmra.mxu3 %vm804_vm8, %v1085_v24 }
 0x31a   : > { %1564 = vmatmul.msk.f32.gmra.mxu2 %vm804_vm8, %v1086_v42  ;;  %1576 = vmatmul.msk.f32.gmra.mxu3 %vm804_vm8, %v1086_v42 }
 0x322   : > { %1565 = vmatmul.msk.f32.gmra.mxu2 %vm804_vm8, %v1087_v43  ;;  %1577 = vmatmul.msk.f32.gmra.mxu3 %vm804_vm8, %v1087_v43 }
 0x32a   : > { %1566 = vmatmul.msk.f32.gmra.mxu2 %vm804_vm8, %v1088_v44  ;;  %1578 = vmatmul.msk.f32.gmra.mxu3 %vm804_vm8, %v1088_v44 }
 0x332   : > { %1567 = vmatmul.msk.f32.gmra.mxu2 %vm804_vm8, %v1089_v45  ;;  %1579 = vmatmul.msk.f32.gmra.mxu3 %vm804_vm8, %v1089_v45 }
 0x33a   : > { %1568 = vmatmul.msk.f32.gmra.mxu2 %vm804_vm8, %v1090_v46  ;;  %1580 = vmatmul.msk.f32.gmra.mxu3 %vm804_vm8, %v1090_v46 }
 0x342   : > { %1569 = vmatmul.msk.f32.gmra.mxu2 %vm804_vm8, %v1091_v48  ;;  %1581 = vmatmul.msk.f32.gmra.mxu3 %vm804_vm8, %v1091_v48 }
 0x34a   : > { %1570 = vmatmul.msk.f32.gmra.mxu2 %vm804_vm8, %v1092_v49  ;;  %1582 = vmatmul.msk.f32.gmra.mxu3 %vm804_vm8, %v1092_v49 }
 0x352   : > { %1571 = vmatmul.msk.f32.gmra.mxu2 %vm804_vm8, %v1093_v50  ;;  %1583 = vmatmul.msk.f32.gmra.mxu3 %vm804_vm8, %v1093_v50 }
 0x35a   : > { %1572 = vmatmul.msk.f32.gmra.mxu2 %vm804_vm8, %v1094_v47  ;;  %1584 = vmatmul.msk.f32.gmra.mxu3 %vm804_vm8, %v1094_v47 }
 0x362   : > { %1573 = vmatmul.msk.f32.gmra.mxu2 %vm804_vm8, %v1095_v51  ;;  %1585 = vmatmul.msk.f32.gmra.mxu3 %vm804_vm8, %v1095_v51 }
 0x38d   : > { %v1149_v52 = vpop.f32.mrf.mxu2  ;;  %v1202_v53 = vpop.f32.mrf.mxu3 }
 0x38e   : > { %1238 = vrot.lane.b32.xlu1 %v1149_v52, %s1808_s30  ;;  %1246 = vrot.lane.b32.xlu2 %v1202_v53, %s1808_s30 }
 0x395   : > { %v1152_v54 = vpop.f32.mrf.mxu2  ;;  %v1205_v55 = vpop.f32.mrf.mxu3 }
 0x396   : > { %1248 = vrot.lane.b32.xlu0 %v1205_v55, %s1808_s30  ;;  %1240 = vrot.lane.b32.xlu2 %v1152_v54, %s1808_s30 }
 0x39d   : > { %v1155_v56 = vpop.f32.mrf.mxu2  ;;  %v1208_v57 = vpop.f32.mrf.mxu3 }
 0x39e   : > { %1250 = vrot.lane.b32.xlu1 %v1208_v57, %s1808_s30  ;;  %1242 = vrot.lane.b32.xlu0 %v1155_v56, %s1808_s30 }
 0x3a5   : > { %v1158_v58 = vpop.f32.mrf.mxu2  ;;  %v1211_v60 = vpop.f32.mrf.mxu3 }
 0x3a6   : > { %1244 = vrot.lane.b32.xlu1 %v1158_v58, %s1808_s30  ;;  %1252 = vrot.lane.b32.xlu2 %v1211_v60, %s1808_s30  ;;  %s1744_s30 = scalar_lea.hbm %s2560_s7, 256 }
 0x3ad   : > { %v1161_v61 = vpop.f32.mrf.mxu2  ;;  %v1214_v62 = vpop.f32.mrf.mxu3 }
 0x3b5   : > { %v2416_v30 = vpop.f32.mrf.mxu2  ;;  %v2418_v63 = vpop.f32.mrf.mxu3 }
 0x3bd   : > { %v2420_v29 = vpop.f32.mrf.mxu2  ;;  %v2422_v31 = vpop.f32.mrf.mxu3 }
 0x3c5   : > { %v2424_v32 = vpop.f32.mrf.mxu2  ;;  %v2426_v0 = vpop.f32.mrf.mxu3 }
 0x3cd   : > { %v1173_v1 = vpop.f32.mrf.mxu2  ;;  %v1226_v2 = vpop.f32.mrf.mxu3 }
 0x3ce   : > { %1286 = vrot.lane.b32.xlu1 %v1226_v2, %s1810_s29  ;;  %1278 = vrot.lane.b32.xlu0 %v1173_v1, %s1810_s29 }
 0x3d5   : > { %v1176_v28 = vpop.f32.mrf.mxu2  ;;  %v1229_v7 = vpop.f32.mrf.mxu3 }
 0x3d6   : > { %1288 = vrot.lane.b32.xlu2 %v1229_v7, %s1810_s29  ;;  %1280 = vrot.lane.b32.xlu1 %v1176_v28, %s1810_s29 }
 0x3dd   : > { %v1179_v25 = vpop.f32.mrf.mxu2  ;;  %v1232_v9 = vpop.f32.mrf.mxu3 }
 0x3de   : > { %1290 = vrot.lane.b32.xlu0 %v1232_v9, %s1810_s29  ;;  %1282 = vrot.lane.b32.xlu2 %v1179_v25, %s1810_s29 }
 0x3e5   : > { %v1182_v11 = vpop.f32.mrf.mxu2  ;;  %v1235_v14 = vpop.f32.mrf.mxu3 }
 0x3e6   : > { %1292 = vrot.lane.b32.xlu1 %v1235_v14, %s1810_s29  ;;  %1339 = vperm.xlu2 %1663, %v1321_v10  }
 0x3e7   : > { %1284 = vrot.lane.b32.xlu0 %v1182_v11, %s1810_s29  ;;  %s2461_s29 = scalar_lea.vmem [#allocation8], %s1504_s14  ;;  %s1593_s14 = sshll.u32 %s1873_s28, 6 }
 0x3e8   : > { %v1247_v34 = vpop.permute.xlu2 %1246  ;;  %s1394_s19 = scalar_lea.hbm %s2560_s7, %s1593_s14  ;;  %s1395_s28 = sshll.u32 %s2461_s29, 4  ;;  %s1396_s28 = int_to_ptr.vmem [resolvable:$true] %s1395_s28 }
 0x3e9   : > { %s1397_s21 = sshll.u32 %s1394_s19, 4  ;;  %s1398_s21 = int_to_ptr.hbm [resolvable:$true] %s1397_s21 }
 0x3ea   : > { %s1738_s20 = sshra.s32 %s1398_s21, 4  ;;  %s1739_s20 = int_to_ptr.hbm [resolvable:$true] %s1738_s20 }
 0x3eb   : > { %s1740_s22 = scalar_lea.hbm %s1739_s20, 64  ;;  %p1745_p9 = scmp.lt.s32.totalorder %s1739_s20, %s2560_s7 }
 0x3ec   : > { %p1741_p6 = scmp.ne.s32.totalorder %s1739_s20, %s1740_s22  ;;  %p1746_p1 = scmp.lt.s32.totalorder %s1744_s30, %s1740_s22 }
 0x3ee   : > { %1334 = vperm.xlu1 %1662, %v1320_v15   ;;  %p1742_p12 = pnand %p1741_p6, %p1901_p10  ;;  %p1747_p3 = por %p1746_p1, %p1745_p9 }
 0x3ef   : > { %1329 = vperm.xlu0 %1661, %v1319_v16  }
 0x3f0   : > { %v1241_v37 = vpop.permute.xlu2 %1240  ;;  %p1743_p2 = pneg %p1742_p12 }
 0x3f2   : > { %p1748_p13 = pnand %p1747_p3, %p1743_p2 }
 0x400   : > { %v1239_v21 = vpop.permute.xlu1 %1238  ;;  %v1253_v46 = vpop.permute.xlu2 %1252 }
 0x401   : > { %v1254_v38 = vsel %vm965_vm9, %v1239_v21, %v1247_v34  ;;  %v1258_v39 = vsel %vm965_vm9, %v1247_v34, %v1239_v21 }
 0x402   : > { %v1262_v40 = vmul.f32 %v1258_v39, %v2288_v3  ;;  %v1263_v41 = vmul.f32 %v1254_v38, %v2290_v4 }
 0x404   : > { %v1270_v44 = vadd.f32 %v1262_v40, %v1161_v61  ;;  %v1271_v45 = vadd.f32 %v1263_v41, %v1214_v62 }
 0x408   : > { %v1249_v22 = vpop.permute.xlu0 %1248 }
 0x409   : > { %v1259_v28 = vsel %vm965_vm9, %v1249_v22, %v1241_v37 }
 0x40a   : > { %v1264_v11 = vmul.f32 %v1259_v28, %v2288_v3 }
 0x410   : > { %v1251_v33 = vpop.permute.xlu1 %1250  ;;  %v1243_v35 = vpop.permute.xlu0 %1242 }
 0x411   : > { %v1256_v7 = vsel %vm965_vm9, %v1243_v35, %v1251_v33  ;;  %v1260_v25 = vsel %vm965_vm9, %v1251_v33, %v1243_v35 }
 0x418   : > { %v1245_v36 = vpop.permute.xlu1 %1244 }
 0x419   : > { %v1257_v1 = vsel %vm965_vm9, %v1245_v36, %v1253_v46  ;;  %v1261_v2 = vsel %vm965_vm9, %v1253_v46, %v1245_v36 }
 0x41a   : > { %v1268_v9 = vmul.f32 %v1261_v2, %v2288_v3  ;;  %v1269_v10 = vmul.f32 %v1257_v1, %v2290_v4 }
 0x41c   : > { %v1276_v36 = vadd.f32 %v1268_v9, %v2424_v32 }
 0x430   : > { %v1289_v55 = vpop.permute.xlu2 %1288 }
 0x440   : > { %v1287_v23 = vpop.permute.xlu1 %1286  ;;  %v1279_v24 = vpop.permute.xlu0 %1278 }
 0x441   : > { %v1294_v42 = vsel %vm1012_vm10, %v1279_v24, %v1287_v23  ;;  %v1298_v43 = vsel %vm1012_vm10, %v1287_v23, %v1279_v24 }
 0x442   : > { %v1302_v48 = vmul.f32 %v1294_v42, %v2304_v17  ;;  %v1303_v49 = vmul.f32 %v1298_v43, %v2306_v18 }
 0x444   : > { %v1310_v50 = vadd.f32 %v1302_v48, %v1270_v44  ;;  %v1311_v47 = vadd.f32 %v1303_v49, %v1271_v45  ;;  %v1272_v44 = vadd.f32 %v1264_v11, %v2416_v30 }
 0x446   : > { %v1342_v51 = vadd.f32 %v1325_v8, %v1310_v50  ;;  %v1343_v52 = vadd.f32 %v1325_v8, %v1311_v47  ;;  %v1266_v8 = vmul.f32 %v1260_v25, %v2288_v3 }
 0x448   : > { %v1350_v53 = vmax.f32 %v1342_v51, 0.0  ;;  %v1351_v54 = vmax.f32 %v1343_v52, 0.0  ;;  %v1281_v61 = vpop.permute.xlu1 %1280  ;;  %v1274_v42 = vadd.f32 %v1266_v8, %v2420_v29 }
 0x449   : > { %v1295_v33 = vsel %vm1012_vm10, %v1281_v61, %v1289_v55  ;;  %v1299_v34 = vsel %vm1012_vm10, %v1289_v55, %v1281_v61 }
 0x44a   : > { %v1358_v56 = vadd.f32 %v1350_v53, %v2120_v5  ;;  %v1359_v57 = vadd.f32 %v1351_v54, %v2123_v6  ;;  %v1283_v5 = vpop.permute.xlu2 %1282  ;;  %v1255_v6 = vsel %vm965_vm9, %v1241_v37, %v1249_v22  ;;  %v1267_v22 = vmul.f32 %v1256_v7, %v2290_v4 }
 0x44b   : > { %v1265_v14 = vmul.f32 %v1255_v6, %v2290_v4  ;;  %v1277_v37 = vadd.f32 %v1269_v10, %v2426_v0  ;;  %v1304_v23 = vmul.f32 %v1295_v33, %v2304_v17  ;;  %v1305_v32 = vmul.f32 %v1299_v34, %v2306_v18 }
 0x44c   : > { %v1366_v58 = vmax.f32 %v1358_v56, 0.0  ;;  %v1367_v60 = vmax.f32 %v1359_v57, 0.0  ;;  %v1275_v43 = vadd.f32 %v1267_v22, %v2422_v31 }
 0x44d   : > { %v1273_v45 = vadd.f32 %v1265_v14, %v2418_v63 }
 0x44e   : > { %1374 = vst [vmem:[%s2461_s29] sm:$0xff] %v1366_v58 }
 0x44f   : > { %1375 = vst [vmem:[%s2461_s29 + $0x8] sm:$0xff] %v1367_v60  ;;  %v1313_v51 = vadd.f32 %v1305_v32, %v1273_v45 }
 0x450   : > { %v1291_v62 = vpop.permute.xlu0 %1290 }
 0x451   : > { %v1296_v15 = vsel %vm1012_vm10, %v1283_v5, %v1291_v62  ;;  %v1300_v16 = vsel %vm1012_vm10, %v1291_v62, %v1283_v5 }
 0x452   : > { %v1306_v3 = vmul.f32 %v1296_v15, %v2304_v17  ;;  %v1307_v4 = vmul.f32 %v1300_v16, %v2306_v18  ;;  %v1340_v59 = vpop.permute.xlu2 %1339 }
 0x454   : > { %v1314_v49 = vadd.f32 %v1306_v3, %v1274_v42  ;;  %v1315_v50 = vadd.f32 %v1307_v4, %v1275_v43 }
 0x458   : > { %v1293_v21 = vpop.permute.xlu1 %1292 }
 0x459   : > { %v1285_v35 = vpop.permute.xlu0 %1284 }
 0x45a   : > { %v1297_v38 = vsel %vm1012_vm10, %v1285_v35, %v1293_v21  ;;  %v1301_v39 = vsel %vm1012_vm10, %v1293_v21, %v1285_v35 }
 0x45b   : > { %v1308_v40 = vmul.f32 %v1297_v38, %v2304_v17  ;;  %v1309_v41 = vmul.f32 %v1301_v39, %v2306_v18  ;;  %v1312_v17 = vadd.f32 %v1304_v23, %v1272_v44 }
 0x45d   : > { %v1316_v24 = vadd.f32 %v1308_v40, %v1276_v36  ;;  %v1317_v0 = vadd.f32 %v1309_v41, %v1277_v37 }
 0x45f   : > { %v1348_v46 = vadd.f32 %v1340_v59, %v1316_v24  ;;  %v1349_v48 = vadd.f32 %v1340_v59, %v1317_v0 }
 0x460   : > { %v1335_v47 = vpop.permute.xlu1 %1334 }
 0x461   : > { %v1356_v18 = vmax.f32 %v1348_v46, 0.0  ;;  %v1357_v52 = vmax.f32 %v1349_v48, 0.0  ;;  %v1346_v53 = vadd.f32 %v1335_v47, %v1314_v49  ;;  %v1347_v54 = vadd.f32 %v1335_v47, %v1315_v50  ;;  %v1330_v29 = vpop.permute.xlu0 %1329 }
 0x462   : > { %v1344_v31 = vadd.f32 %v1330_v29, %v1312_v17  ;;  %v1345_v55 = vadd.f32 %v1330_v29, %v1313_v51 }
 0x463   : > { %v1364_v30 = vadd.f32 %v1356_v18, %v2151_v26  ;;  %v1365_v63 = vadd.f32 %v1357_v52, %v2154_v27  ;;  %v1354_v56 = vmax.f32 %v1346_v53, 0.0  ;;  %v1355_v57 = vmax.f32 %v1347_v54, 0.0 }
 0x464   : > { %v1352_v58 = vmax.f32 %v1344_v31, 0.0  ;;  %v1353_v60 = vmax.f32 %v1345_v55, 0.0 }
 0x465   : > { %v1372_v61 = vmax.f32 %v1364_v30, 0.0  ;;  %v1373_v62 = vmax.f32 %v1365_v63, 0.0  ;;  %v1362_v1 = vadd.f32 %v1354_v56, %v2141_v19  ;;  %v1363_v26 = vadd.f32 %v1355_v57, %v2144_v20 }
 0x466   : > { %v1360_v27 = vadd.f32 %v1352_v58, %v2131_v12  ;;  %v1361_v2 = vadd.f32 %v1353_v60, %v2134_v13 }
 0x467   : > { %1380 = vst [vmem:[%s2461_s29 + $0x30] sm:$0xff] %v1372_v61  ;;  %v1370_v5 = vmax.f32 %v1362_v1, 0.0  ;;  %v1371_v6 = vmax.f32 %v1363_v26, 0.0 }
 0x468   : > { %1381 = vst [vmem:[%s2461_s29 + $0x38] sm:$0xff] %v1373_v62  ;;  %v1368_v28 = vmax.f32 %v1360_v27, 0.0  ;;  %v1369_v7 = vmax.f32 %v1361_v2, 0.0 }
 0x469   : > { %1378 = vst [vmem:[%s2461_s29 + $0x20] sm:$0xff] %v1370_v5 }
 0x46a   : > { %1379 = vst [vmem:[%s2461_s29 + $0x28] sm:$0xff] %v1371_v6 }
 0x46b   : > { %1376 = vst [vmem:[%s2461_s29 + $0x10] sm:$0xff] %v1368_v28 }
 0x46c   : > { %1377 = vst [vmem:[%s2461_s29 + $0x18] sm:$0xff] %v1369_v7 }
 0x46d   : > { %1751 = shalt.err (!%p1748_p13)
}
 0x46e   : > { %s1811_s10 = smov 256  }
 0x46f   : > { %1598 = dma.vmem_to_hbm [thread:$0]  (%p1901_p10), %s1396_s28, 1024, %s1398_s21, %s1383_s23, %s1811_s10, %s1811_s10, %s1807_s8  }
 0x470 PF: > { %p1612_p0 = scmp.ge.s32.totalorder %s1794_s27, 2  ;;  %s1412_s26 = sand.u32 1, %s1782_s24  }
 0x471   : > { %s1413_s11 = scalar_lea.sflag [#allocation5], %s1412_s26 }
 0x472   : > { %p1608_p4 = pnand %p1612_p0, %p1905_p11 }
 0x474   : > { %p1609_p5 = pneg %p1608_p4 }
 0x476   : > { %1777 = dma.done.wait (%p1609_p5), %s1413_s11, 1024  }
 0x477   : > { %1779 = vsyncadd (%p1609_p5), %s1413_s11, 4294966272  ;;  %s2578_s27 = sld [smem:[#allocation13_spill]]  ;;  %s2581_s24 = smov %s1786_s25 }
 0x478   : > { %s2579_s29 = sld [smem:[#allocation12_spill]] }
 0x479   : > { %s2580_s26 = sld [smem:[#allocation14_spill]] }
 0x47d   : > { %p23_p7 = scmp.ge.s32.totalorder %s2578_s27, 6  }
 0x47e   : > { %s2582_s25 = smov %s2579_s29 }
 0x47f   :  { %25 = sbr.rel (!%p23_p7) target bundleno = 9 (0x9), region = 122 }
 0x484   :  { %1419 = vsyncpa [#allocation4], 1 }
 0x485   :  { %1421 = vsyncpa [#allocation4 + $0x1], 1 }
 0x486   :  { %1422 = vsyncpa [#allocation7], 1 }
 0x487   :  { %1424 = vsyncpa [#allocation7 + $0x1], 1 }
 0x488   :  { %1425 = vsyncpa [#allocation5], 1 }
 0x489   :  { %1427 = vsyncpa [#allocation5 + $0x1], 1 }

</bundles_post_ra>
